<compile_context>
chip_gen: v7x
topology: tpu7x:2x2x1
jax: 0.10.0
libtpu: 0.0.40
codegen_flags: <defaults>
</compile_context>

<pallas_src>
import jax
import jax.numpy as jnp
from jax import lax
from jax.experimental import pallas as pl
from jax.experimental.pallas import tpu as pltpu


# Set to jnp.bfloat16 on v5e/v6e/v7x for 2-4x MXU throughput and half the DMA
# bytes (loosen the verification tolerance to ~2e-2 if you do).
_DOT_DTYPE = jnp.float32


def _vmem_limit_bytes():
    """Per-generation VMEM budget: 3/4 of physical, capped, never below 32 MiB."""
    cap = 64 * 1024 * 1024
    try:
        info = pltpu.get_tpu_info()
        cap = int(getattr(info, "vmem_capacity_bytes", cap) or cap)
    except Exception:
        pass
    return max(32 * 1024 * 1024, min(cap * 3 // 4, 100 * 1024 * 1024))


# ----------------------------------------------------------------------------
# Kernel 1: ConvTranspose2d(kernel=2, stride=2).
# out[n, 2i+a, 2j+b, co] = sum_ci x[n, i, j, ci] * w_up[ci, co, a, b] + b_up[co]
# Stored as o[n, i, a, j, b*Co+co] so the final NHWC view is a free reshape.
# ----------------------------------------------------------------------------
def _make_upsample_kernel(th, w, cin, co, dot_dtype):
    co2 = 2 * co

    def kernel(x_ref, w_ref, b_ref, o_ref):
        wmat = w_ref[...]          # (Cin, 4*Co) streamed from VMEM into the MXU
        bias4 = b_ref[...]         # (1, 4*Co) f32
        if w % 8 == 0:
            # Whole row tile as one (TH*W, Cin) @ (Cin, 4*Co) matmul; the
            # sublane merge/split is layout-free because W % 8 == 0.
            xf = x_ref[0].reshape(th * w, cin).astype(dot_dtype)
            z = jnp.dot(xf, wmat, preferred_element_type=jnp.float32) + bias4
            o_ref[0, :, 0, :, :] = z[:, :co2].reshape(th, w, co2)
            o_ref[0, :, 1, :, :] = z[:, co2:].reshape(th, w, co2)
        else:
            def row_body(r, carry):
                xr = x_ref[0, pl.ds(r, 1), :, :][0].astype(dot_dtype)   # (W, Cin)
                z = jnp.dot(xr, wmat, preferred_element_type=jnp.float32) + bias4
                o_ref[0, r, 0, :, :] = z[:, :co2]
                o_ref[0, r, 1, :, :] = z[:, co2:]
                return carry

            lax.fori_loop(0, th, row_body, 0)

    return kernel


def _pick_up_row_tile(h, w, cin, co, vmem_limit):
    """Largest divisor of h whose double-buffered block footprint fits budget."""
    budget = int(vmem_limit * 0.6)
    fixed = (cin * 4 * co + 4 * co) * 4          # fused weight + bias (f32 upper bound)
    best = 1
    for d in range(1, h + 1):
        if h % d:
            continue
        in_b = d * w * cin * 4
        out_b = d * 2 * w * 2 * co * 4
        if fixed + 2 * (in_b + out_b) <= budget:
            best = d
    return best


def conv_transpose2x2_stride2(x_nhwc, w_up, b_up, *, dot_dtype, vmem_limit):
    """x_nhwc: (N, H, W, Cin); w_up: (Cin, Co, 2, 2) [PyTorch layout]; b_up: (Co,)."""
    n, h, w, cin = x_nhwc.shape
    co = w_up.shape[1]
    # w_cat[ci, a*2*Co + b*Co + co] = w_up[ci, co, a, b]
    w_cat = jnp.transpose(w_up, (0, 2, 3, 1)).reshape(cin, 4 * co).astype(dot_dtype)
    bias4 = jnp.tile(b_up, 4).reshape(1, 4 * co)

    th = _pick_up_row_tile(h, w, cin, co, vmem_limit)
    kernel = _make_upsample_kernel(th, w, cin, co, dot_dtype)
    out = pl.pallas_call(
        kernel,
        out_shape=jax.ShapeDtypeStruct((n, h, 2, w, 2 * co), jnp.float32),
        grid=(n, h // th),
        in_specs=[
            pl.BlockSpec((1, th, w, cin), lambda i, t: (i, t, 0, 0)),
            pl.BlockSpec((cin, 4 * co), lambda i, t: (0, 0)),
            pl.BlockSpec((1, 4 * co), lambda i, t: (0, 0)),
        ],
        out_specs=pl.BlockSpec((1, th, 2, w, 2 * co), lambda i, t: (i, t, 0, 0, 0)),
        compiler_params=pltpu.CompilerParams(
            dimension_semantics=("parallel", "parallel"),
            vmem_limit_bytes=vmem_limit,
        ),
    )(x_nhwc, w_cat, bias4)
    # Contiguous (free) reshape -> upsampled NHWC map.
    return out.reshape(n, 2 * h, 2 * w, co)


# ----------------------------------------------------------------------------
# Kernel 2: fused [crop +] channel-concat + 3x3 VALID conv + bias + ReLU.
# H-tiled grid; per output row, 9 accumulating lane-aligned matmuls per source.
# ----------------------------------------------------------------------------
def _make_conv3x3_relu_kernel(src_meta, th, wo, cout, dot_dtype):
    # src_meta: tuple of (row_off_in_kernel, col_off, channels, weight_row_base)

    def kernel(*refs):
        nsrc = len(src_meta)
        in_refs = refs[:nsrc]
        w_ref, b_ref, o_ref = refs[nsrc:]
        # Hoist the bias broadcast out of the row loop (JAX does not CSE it).
        bias_b = jnp.broadcast_to(b_ref[...], (wo, cout))

        def row_body(r, carry):
            acc = None
            for ref, (roff, coff, c, wbase) in zip(in_refs, src_meta):
                for ky in range(3):
                    # One row load per (source, ky); dynamic row index.
                    row = ref[0, pl.ds(roff + r + ky, 1), :, :][0]      # (Win, C)
                    for kx in range(3):
                        xs = row[coff + kx:coff + kx + wo, :].astype(dot_dtype)
                        base = wbase + (ky * 3 + kx) * c
                        wt = w_ref[base:base + c, :].astype(dot_dtype)  # (C, Cout)
                        d = jnp.dot(xs, wt, preferred_element_type=jnp.float32)
                        acc = d if acc is None else acc + d
            o_ref[0, r, :, :] = jnp.maximum(acc + bias_b, 0.0).astype(o_ref.dtype)
            return carry

        lax.fori_loop(0, th, row_body, 0)

    return kernel


def _pick_conv_row_tile(ho, wo, cout, sources, w_nrows, vmem_limit):
    """Largest divisor of Ho whose double-buffered halo-band footprint fits."""
    budget = int(vmem_limit * 0.6)
    fixed = (w_nrows * cout + cout) * 4
    best = 1
    for d in range(1, ho + 1):
        if ho % d:
            continue
        in_b = 0
        for x, _, _ in sources:
            hin, win, c = x.shape[1], x.shape[2], x.shape[3]
            rows = hin if d == ho else d + 2
            in_b += rows * win * c * 4
        out_b = d * wo * cout * 4
        if fixed + 2 * (in_b + out_b) <= budget:
            best = d
    return best
    # TODO(synk): add W-tiling (column halo) for images too wide for even d=1.


def conv3x3_relu(sources, w_flat, bias, out_hw, *, dot_dtype, vmem_limit):
    """sources: list of (x_nhwc, row_off, col_off); VALID 3x3 conv + bias + ReLU.

    The effective conv input is the channel concat over sources of
    x[:, row_off:row_off+Ho+2, col_off:col_off+Wo+2, :]; the crop and the
    concat are fused into the kernel (static offsets + per-source weight base).
    """
    n = sources[0][0].shape[0]
    ho, wo = out_hw
    cout = w_flat.shape[1]

    th = _pick_conv_row_tile(ho, wo, cout, sources, w_flat.shape[0], vmem_limit)
    n_tiles = ho // th
    band = th + 2

    chans = [x.shape[-1] for x, _, _ in sources]
    wbases, acc = [], 0
    for c in chans:
        wbases.append(acc)
        acc += 9 * c

    src_meta = []
    in_specs = []
    for (x, roff, coff), c, wb in zip(sources, chans, wbases):
        hin, win = x.shape[1], x.shape[2]
        if n_tiles == 1:
            # Whole image fits the budget: plain Blocked spec, crop offset
            # applied as a static in-kernel row offset.
            in_specs.append(
                pl.BlockSpec((1, hin, win, c),
                             lambda nidx, tidx: (nidx, 0, 0, 0)))
            src_meta.append((roff, coff, c, wb))
        else:
            # H-tiled: (TH+2)-row halo band fetched via an element-offset
            # (pl.Element) row window; the crop offset folds into the offset.
            in_specs.append(
                pl.BlockSpec((1, pl.Element(band), win, c),
                             lambda nidx, tidx, _r=roff: (nidx, _r + tidx * th, 0, 0)))
            src_meta.append((0, coff, c, wb))

    in_specs += [
        pl.BlockSpec(w_flat.shape, lambda nidx, tidx: (0, 0)),
        pl.BlockSpec((1, cout), lambda nidx, tidx: (0, 0)),
    ]

    kernel = _make_conv3x3_relu_kernel(tuple(src_meta), th, wo, cout, dot_dtype)
    return pl.pallas_call(
        kernel,
        out_shape=jax.ShapeDtypeStruct((n, ho, wo, cout), jnp.float32),
        grid=(n, n_tiles),
        in_specs=in_specs,
        out_specs=pl.BlockSpec((1, th, wo, cout),
                               lambda nidx, tidx: (nidx, tidx, 0, 0)),
        compiler_params=pltpu.CompilerParams(
            dimension_semantics=("parallel", "parallel"),
            vmem_limit_bytes=vmem_limit,
        ),
    )(*[x for x, _, _ in sources], w_flat.astype(dot_dtype),
      bias.reshape(1, cout))
    # TODO(synk): Cout < 128 still produces masked stores; a lane-dense /
    #             NCHW-direct output layout would remove them and the final
    #             wrapper transpose.


# ----------------------------------------------------------------------------
# Full UpStep forward.
# ----------------------------------------------------------------------------
@jax.jit
def up_step(x1_nchw, x2_nchw, w_up, b_up, w_c1, b_c1, w_c2, b_c2):
    vmem_limit = _vmem_limit_bytes()

    # NCHW (PyTorch) -> NHWC for the kernels.
    x1 = jnp.transpose(x1_nchw, (0, 2, 3, 1))
    x2 = jnp.transpose(x2_nchw, (0, 2, 3, 1))
    n, h, w, cin = x1.shape
    co = w_up.shape[1]                      # = cin // 2
    c_skip = x2.shape[-1]
    assert c_skip + co == w_c1.shape[2]

    # 1) 2x2 / stride-2 transpose conv (row-tiled, pipelined, fused weight).
    up = conv_transpose2x2_stride2(x1, w_up, b_up,
                                   dot_dtype=_DOT_DTYPE, vmem_limit=vmem_limit)
    th_out, tw_out = 2 * h, 2 * w

    # 2) Center-crop offsets (torchvision CenterCrop formula), applied as
    #    static offsets inside the conv kernel -- no HBM slice copy.
    top = int(round((x2.shape[1] - th_out) / 2.0))
    left = int(round((x2.shape[2] - tw_out) / 2.0))

    # 3) conv1 fuses crop + concat([x2_cropped, up], channel) + 3x3 conv + ReLU.
    c1 = w_c1.shape[-1]
    w1_flat = jnp.concatenate(
        [w_c1[:, :, :c_skip, :].reshape(9 * c_skip, c1),
         w_c1[:, :, c_skip:, :].reshape(9 * co, c1)], axis=0)
    y1 = conv3x3_relu([(x2, top, left), (up, 0, 0)], w1_flat, b_c1,
                      (th_out - 2, tw_out - 2),
                      dot_dtype=_DOT_DTYPE, vmem_limit=vmem_limit)

    # 4) conv2: plain 3x3 conv + bias + ReLU.
    c2 = w_c2.shape[-1]
    w2_flat = w_c2.reshape(9 * c1, c2)
    y2 = conv3x3_relu([(y1, 0, 0)], w2_flat, b_c2,
                      (th_out - 4, tw_out - 4),
                      dot_dtype=_DOT_DTYPE, vmem_limit=vmem_limit)

    # TODO(synk): fuse the upsample into conv1 and keep conv1's row band in a
    #             VMEM rolling buffer feeding conv2 (v5e HBM roofline win).
    return jnp.transpose(y2, (0, 3, 1, 2))                  # back to NCHW


# ----------------------------------------------------------------------------
# Pure-JAX reference (verification only).
# ----------------------------------------------------------------------------
def _center_crop_nhwc(x, th, tw):
    h, w = x.shape[1], x.shape[2]
    top = int(round((h - th) / 2.0))
    left = int(round((w - tw) / 2.0))
    return x[:, top:top + th, left:left + tw, :]


def up_step_ref(x1_nchw, x2_nchw, w_up, b_up, w_c1, b_c1, w_c2, b_c2):
    x1 = jnp.transpose(x1_nchw, (0, 2, 3, 1))
    x2 = jnp.transpose(x2_nchw, (0, 2, 3, 1))
    n, h, w, _ = x1.shape
    co = w_up.shape[1]
    up = jnp.einsum("nhwi,ioab->nhawbo", x1, w_up).reshape(n, 2 * h, 2 * w, co) + b_up
    x2c = _center_crop_nhwc(x2, 2 * h, 2 * w)
    xcat = jnp.concatenate([x2c, up], axis=-1)

    def conv(x, wk, b):
        y = lax.conv_general_dilated(
            x, wk, (1, 1), "VALID", dimension_numbers=("NHWC", "HWIO", "NHWC")) + b
        return jnp.maximum(y, 0.0)

    y = conv(conv(xcat, w_c1, b_c1), w_c2, b_c2)
    return jnp.transpose(y, (0, 3, 1, 2))


if __name__ == "__main__":
    key = jax.random.PRNGKey(0)
    N, in_ch, out_ch = 2, 4, 8
    H1 = W1 = 8          # x1 spatial (before 2x upsampling)
    H2 = W2 = 18         # x2 spatial (skip connection, center-cropped to 16)

    ks = jax.random.split(key, 8)
    x1 = jax.random.normal(ks[0], (N, in_ch, H1, W1), jnp.float32)        # NCHW
    x2 = jax.random.normal(ks[1], (N, in_ch // 2, H2, W2), jnp.float32)   # NCHW

    # Deterministic parameters (shapes from the module's __init__).
    w_up = 0.1 * jax.random.normal(ks[2], (in_ch, in_ch // 2, 2, 2), jnp.float32)
    b_up = 0.1 * jax.random.normal(ks[3], (in_ch // 2,), jnp.float32)
    w_c1 = 0.1 * jax.random.normal(ks[4], (3, 3, in_ch, out_ch), jnp.float32)   # HWIO
    b_c1 = 0.1 * jax.random.normal(ks[5], (out_ch,), jnp.float32)
    w_c2 = 0.1 * jax.random.normal(ks[6], (3, 3, out_ch, out_ch), jnp.float32)  # HWIO
    b_c2 = 0.1 * jax.random.normal(ks[7], (out_ch,), jnp.float32)

    out = up_step(x1, x2, w_up, b_up, w_c1, b_c1, w_c2, b_c2)
    out = jax.block_until_ready(out)
    assert out.shape == (N, out_ch, 12, 12), out.shape

    ref = up_step_ref(x1, x2, w_up, b_up, w_c1, b_c1, w_c2, b_c2)
    ref = jax.block_until_ready(ref)
    if not jnp.allclose(out, ref, atol=1e-4, rtol=1e-4):
        raise AssertionError("Pallas UpStep does not match JAX reference")

    print("KERNEL_OK")
</pallas_src>

<mosaic_0001>
module attributes {stable_mosaic.version = 11 : i64} {
  func.func @kernel(%arg0: i32, %arg1: i32, %arg2: memref<1x8x8x4xf32, #tpu.memory_space<vmem>>, %arg3: memref<4x8xf32, #tpu.memory_space<vmem>>, %arg4: memref<1x8xf32, #tpu.memory_space<vmem>>, %arg5: memref<1x8x2x8x4xf32, #tpu.memory_space<vmem>>) attributes {dimension_semantics = [#tpu.dimension_semantics<parallel>, #tpu.dimension_semantics<parallel>], iteration_bounds = array<i64: 2, 1>, scalar_prefetch = 0 : i64, scratch_operands = 0 : i64, tpu.core_type = #tpu.core_type<tc>, window_params = [{transform_indices = @transform_0, window_bounds = array<i64: 1, 8, 8, 4>}, {pipeline_mode = #tpu.pipeline_mode<synchronous>, transform_indices = @transform_1, window_bounds = array<i64: 4, 8>}, {pipeline_mode = #tpu.pipeline_mode<synchronous>, transform_indices = @transform_2, window_bounds = array<i64: 1, 8>}, {transform_indices = @transform_3, window_bounds = array<i64: 1, 8, 2, 8, 4>}]} {
    %c0 = arith.constant 0 : index
    %c0_0 = arith.constant 0 : index
    %0 = vector.load %arg3[%c0, %c0_0] : memref<4x8xf32, #tpu.memory_space<vmem>>, vector<4x8xf32>
    %c0_1 = arith.constant 0 : index
    %c0_2 = arith.constant 0 : index
    %1 = vector.load %arg4[%c0_1, %c0_2] : memref<1x8xf32, #tpu.memory_space<vmem>>, vector<1x8xf32>
    %c0_3 = arith.constant 0 : index
    %c0_4 = arith.constant 0 : index
    %c0_5 = arith.constant 0 : index
    %c0_6 = arith.constant 0 : index
    %2 = vector.load %arg2[%c0_3, %c0_4, %c0_5, %c0_6] : memref<1x8x8x4xf32, #tpu.memory_space<vmem>>, vector<1x8x8x4xf32>
    %3 = vector.shape_cast %2 : vector<1x8x8x4xf32> to vector<8x8x4xf32>
    %4 = vector.shape_cast %3 : vector<8x8x4xf32> to vector<64x4xf32>
    %cst = arith.constant dense<0.000000e+00> : vector<64x8xf32>
    %5 = tpu.matmul %4, %0, %cst {dimension_numbers = #tpu.dot_dimension_numbers<[1], [0], [0], [1], [0, 0, 1, 1], [], []>} : vector<64x4xf32>, vector<4x8xf32>, vector<64x8xf32> -> vector<64x8xf32>
    %6 = vector.broadcast %1 : vector<1x8xf32> to vector<64x8xf32>
    %7 = arith.addf %5, %6 : vector<64x8xf32>
    %8 = vector.extract_strided_slice %7 {offsets = [0, 0], sizes = [64, 4], strides = [1, 1]} : vector<64x8xf32> to vector<64x4xf32>
    %9 = vector.shape_cast %8 : vector<64x4xf32> to vector<8x8x4xf32>
    %c0_7 = arith.constant 0 : index
    %c0_8 = arith.constant 0 : index
    %c0_9 = arith.constant 0 : index
    %c0_10 = arith.constant 0 : index
    %c0_11 = arith.constant 0 : index
    %10 = vector.load %arg5[%c0_7, %c0_8, %c0_9, %c0_10, %c0_11] : memref<1x8x2x8x4xf32, #tpu.memory_space<vmem>>, vector<1x8x1x8x4xf32>
    %11 = vector.shape_cast %10 : vector<1x8x1x8x4xf32> to vector<8x8x4xf32>
    %12 = vector.shape_cast %9 : vector<8x8x4xf32> to vector<1x8x1x8x4xf32>
    tpu.vector_store %arg5[%c0_7, %c0_8, %c0_9, %c0_10, %c0_11], %12 {strides = array<i32>} : memref<1x8x2x8x4xf32, #tpu.memory_space<vmem>>, vector<1x8x1x8x4xf32>,
    %13 = vector.extract_strided_slice %7 {offsets = [0, 4], sizes = [64, 4], strides = [1, 1]} : vector<64x8xf32> to vector<64x4xf32>
    %14 = vector.shape_cast %13 : vector<64x4xf32> to vector<8x8x4xf32>
    %c0_12 = arith.constant 0 : index
    %c0_13 = arith.constant 0 : index
    %c1 = arith.constant 1 : index
    %c0_14 = arith.constant 0 : index
    %c0_15 = arith.constant 0 : index
    %15 = vector.load %arg5[%c0_12, %c0_13, %c1, %c0_14, %c0_15] : memref<1x8x2x8x4xf32, #tpu.memory_space<vmem>>, vector<1x8x1x8x4xf32>
    %16 = vector.shape_cast %15 : vector<1x8x1x8x4xf32> to vector<8x8x4xf32>
    %17 = vector.shape_cast %14 : vector<8x8x4xf32> to vector<1x8x1x8x4xf32>
    tpu.vector_store %arg5[%c0_12, %c0_13, %c1, %c0_14, %c0_15], %17 {strides = array<i32>} : memref<1x8x2x8x4xf32, #tpu.memory_space<vmem>>, vector<1x8x1x8x4xf32>,
    return
  }
  func.func @transform_0(%arg0: i32, %arg1: i32) -> (i32, i32, i32, i32) {
    %c0_i32 = arith.constant 0 : i32
    %c0_i32_0 = arith.constant 0 : i32
    %c0_i32_1 = arith.constant 0 : i32
    return %arg0, %arg1, %c0_i32, %c0_i32_0 : i32, i32, i32, i32
  }
  func.func @transform_1(%arg0: i32, %arg1: i32) -> (i32, i32) {
    %c0_i32 = arith.constant 0 : i32
    %c0_i32_0 = arith.constant 0 : i32
    %c0_i32_1 = arith.constant 0 : i32
    return %c0_i32, %c0_i32_0 : i32, i32
  }
  func.func @transform_2(%arg0: i32, %arg1: i32) -> (i32, i32) {
    %c0_i32 = arith.constant 0 : i32
    %c0_i32_0 = arith.constant 0 : i32
    %c0_i32_1 = arith.constant 0 : i32
    return %c0_i32, %c0_i32_0 : i32, i32
  }
  func.func @transform_3(%arg0: i32, %arg1: i32) -> (i32, i32, i32, i32, i32) {
    %c0_i32 = arith.constant 0 : i32
    %c0_i32_0 = arith.constant 0 : i32
    %c0_i32_1 = arith.constant 0 : i32
    %c0_i32_2 = arith.constant 0 : i32
    return %arg0, %arg1, %c0_i32, %c0_i32_0, %c0_i32_1 : i32, i32, i32, i32, i32
  }
}

module attributes {stable_mosaic.version = 11 : i64} {
  func.func @kernel(%arg0: i32, %arg1: i32, %arg2: memref<1x14x14x8xf32, #tpu.memory_space<vmem>>, %arg3: memref<72x8xf32, #tpu.memory_space<vmem>>, %arg4: memref<1x8xf32, #tpu.memory_space<vmem>>, %arg5: memref<1x12x12x8xf32, #tpu.memory_space<vmem>>) attributes {dimension_semantics = [#tpu.dimension_semantics<parallel>, #tpu.dimension_semantics<parallel>], iteration_bounds = array<i64: 2, 1>, scalar_prefetch = 0 : i64, scratch_operands = 0 : i64, tpu.core_type = #tpu.core_type<tc>, window_params = [{transform_indices = @transform_0, window_bounds = array<i64: 1, 14, 14, 8>}, {pipeline_mode = #tpu.pipeline_mode<synchronous>, transform_indices = @transform_1, window_bounds = array<i64: 72, 8>}, {pipeline_mode = #tpu.pipeline_mode<synchronous>, transform_indices = @transform_2, window_bounds = array<i64: 1, 8>}, {transform_indices = @transform_3, window_bounds = array<i64: 1, 12, 12, 8>}]} {
    %c0 = arith.constant 0 : index
    %c0_0 = arith.constant 0 : index
    %0 = vector.load %arg4[%c0, %c0_0] : memref<1x8xf32, #tpu.memory_space<vmem>>, vector<1x8xf32>
    %1 = vector.shape_cast %0 : vector<1x8xf32> to vector<1x8xf32>
    %2 = vector.broadcast %1 : vector<1x8xf32> to vector<12x8xf32>
    %c0_i32 = arith.constant 0 : i32
    %c12_i32 = arith.constant 12 : i32
    %3 = arith.addi %c0_i32, %c12_i32 : i32
    %c1_i32 = arith.constant 1 : i32
    scf.for %arg6 = %c0_i32 to %3 step %c1_i32  : i32 {
      %c0_i32_2 = arith.constant 0 : i32
      %4 = arith.addi %c0_i32_2, %arg6 : i32
      %c0_i32_3 = arith.constant 0 : i32
      %5 = arith.addi %4, %c0_i32_3 : i32
      %c0_4 = arith.constant 0 : index
      %6 = arith.index_cast %5 : i32 to index
      %c0_5 = arith.constant 0 : index
      %c0_6 = arith.constant 0 : index
      %7 = vector.load %arg2[%c0_4, %6, %c0_5, %c0_6] : memref<1x14x14x8xf32, #tpu.memory_space<vmem>>, vector<1x1x14x8xf32>
      %8 = vector.shape_cast %7 : vector<1x1x14x8xf32> to vector<1x14x8xf32>
      %9 = vector.shape_cast %8 : vector<1x14x8xf32> to vector<14x8xf32>
      %10 = vector.extract_strided_slice %9 {offsets = [0, 0], sizes = [12, 8], strides = [1, 1]} : vector<14x8xf32> to vector<12x8xf32>
      %c0_7 = arith.constant 0 : index
      %c0_8 = arith.constant 0 : index
      %11 = vector.load %arg3[%c0_7, %c0_8] : memref<72x8xf32, #tpu.memory_space<vmem>>, vector<8x8xf32>
      %cst = arith.constant dense<0.000000e+00> : vector<12x8xf32>
      %12 = tpu.matmul %10, %11, %cst {dimension_numbers = #tpu.dot_dimension_numbers<[1], [0], [0], [1], [0, 0, 1, 1], [], []>} : vector<12x8xf32>, vector<8x8xf32>, vector<12x8xf32> -> vector<12x8xf32>
      %13 = vector.extract_strided_slice %9 {offsets = [1, 0], sizes = [12, 8], strides = [1, 1]} : vector<14x8xf32> to vector<12x8xf32>
      %c8 = arith.constant 8 : index
      %c0_9 = arith.constant 0 : index
      %14 = vector.load %arg3[%c8, %c0_9] : memref<72x8xf32, #tpu.memory_space<vmem>>, vector<8x8xf32>
      %cst_10 = arith.constant dense<0.000000e+00> : vector<12x8xf32>
      %15 = tpu.matmul %13, %14, %cst_10 {dimension_numbers = #tpu.dot_dimension_numbers<[1], [0], [0], [1], [0, 0, 1, 1], [], []>} : vector<12x8xf32>, vector<8x8xf32>, vector<12x8xf32> -> vector<12x8xf32>
      %16 = arith.addf %12, %15 : vector<12x8xf32>
      %17 = vector.extract_strided_slice %9 {offsets = [2, 0], sizes = [12, 8], strides = [1, 1]} : vector<14x8xf32> to vector<12x8xf32>
      %c16 = arith.constant 16 : index
      %c0_11 = arith.constant 0 : index
      %18 = vector.load %arg3[%c16, %c0_11] : memref<72x8xf32, #tpu.memory_space<vmem>>, vector<8x8xf32>
      %cst_12 = arith.constant dense<0.000000e+00> : vector<12x8xf32>
      %19 = tpu.matmul %17, %18, %cst_12 {dimension_numbers = #tpu.dot_dimension_numbers<[1], [0], [0], [1], [0, 0, 1, 1], [], []>} : vector<12x8xf32>, vector<8x8xf32>, vector<12x8xf32> -> vector<12x8xf32>
      %20 = arith.addf %16, %19 : vector<12x8xf32>
      %c0_i32_13 = arith.constant 0 : i32
      %21 = arith.addi %c0_i32_13, %arg6 : i32
      %c1_i32_14 = arith.constant 1 : i32
      %22 = arith.addi %21, %c1_i32_14 : i32
      %c0_15 = arith.constant 0 : index
      %23 = arith.index_cast %22 : i32 to index
      %c0_16 = arith.constant 0 : index
      %c0_17 = arith.constant 0 : index
      %24 = vector.load %arg2[%c0_15, %23, %c0_16, %c0_17] : memref<1x14x14x8xf32, #tpu.memory_space<vmem>>, vector<1x1x14x8xf32>
      %25 = vector.shape_cast %24 : vector<1x1x14x8xf32> to vector<1x14x8xf32>
      %26 = vector.shape_cast %25 : vector<1x14x8xf32> to vector<14x8xf32>
      %27 = vector.extract_strided_slice %26 {offsets = [0, 0], sizes = [12, 8], strides = [1, 1]} : vector<14x8xf32> to vector<12x8xf32>
      %c24 = arith.constant 24 : index
      %c0_18 = arith.constant 0 : index
      %28 = vector.load %arg3[%c24, %c0_18] : memref<72x8xf32, #tpu.memory_space<vmem>>, vector<8x8xf32>
      %cst_19 = arith.constant dense<0.000000e+00> : vector<12x8xf32>
      %29 = tpu.matmul %27, %28, %cst_19 {dimension_numbers = #tpu.dot_dimension_numbers<[1], [0], [0], [1], [0, 0, 1, 1], [], []>} : vector<12x8xf32>, vector<8x8xf32>, vector<12x8xf32> -> vector<12x8xf32>
      %30 = arith.addf %20, %29 : vector<12x8xf32>
      %31 = vector.extract_strided_slice %26 {offsets = [1, 0], sizes = [12, 8], strides = [1, 1]} : vector<14x8xf32> to vector<12x8xf32>
      %c32 = arith.constant 32 : index
      %c0_20 = arith.constant 0 : index
      %32 = vector.load %arg3[%c32, %c0_20] : memref<72x8xf32, #tpu.memory_space<vmem>>, vector<8x8xf32>
      %cst_21 = arith.constant dense<0.000000e+00> : vector<12x8xf32>
      %33 = tpu.matmul %31, %32, %cst_21 {dimension_numbers = #tpu.dot_dimension_numbers<[1], [0], [0], [1], [0, 0, 1, 1], [], []>} : vector<12x8xf32>, vector<8x8xf32>, vector<12x8xf32> -> vector<12x8xf32>
      %34 = arith.addf %30, %33 : vector<12x8xf32>
      %35 = vector.extract_strided_slice %26 {offsets = [2, 0], sizes = [12, 8], strides = [1, 1]} : vector<14x8xf32> to vector<12x8xf32>
      %c40 = arith.constant 40 : index
      %c0_22 = arith.constant 0 : index
      %36 = vector.load %arg3[%c40, %c0_22] : memref<72x8xf32, #tpu.memory_space<vmem>>, vector<8x8xf32>
      %cst_23 = arith.constant dense<0.000000e+00> : vector<12x8xf32>
      %37 = tpu.matmul %35, %36, %cst_23 {dimension_numbers = #tpu.dot_dimension_numbers<[1], [0], [0], [1], [0, 0, 1, 1], [], []>} : vector<12x8xf32>, vector<8x8xf32>, vector<12x8xf32> -> vector<12x8xf32>
      %38 = arith.addf %34, %37 : vector<12x8xf32>
      %c0_i32_24 = arith.constant 0 : i32
      %39 = arith.addi %c0_i32_24, %arg6 : i32
      %c2_i32 = arith.constant 2 : i32
      %40 = arith.addi %39, %c2_i32 : i32
      %c0_25 = arith.constant 0 : index
      %41 = arith.index_cast %40 : i32 to index
      %c0_26 = arith.constant 0 : index
      %c0_27 = arith.constant 0 : index
      %42 = vector.load %arg2[%c0_25, %41, %c0_26, %c0_27] : memref<1x14x14x8xf32, #tpu.memory_space<vmem>>, vector<1x1x14x8xf32>
      %43 = vector.shape_cast %42 : vector<1x1x14x8xf32> to vector<1x14x8xf32>
      %44 = vector.shape_cast %43 : vector<1x14x8xf32> to vector<14x8xf32>
      %45 = vector.extract_strided_slice %44 {offsets = [0, 0], sizes = [12, 8], strides = [1, 1]} : vector<14x8xf32> to vector<12x8xf32>
      %c48 = arith.constant 48 : index
      %c0_28 = arith.constant 0 : index
      %46 = vector.load %arg3[%c48, %c0_28] : memref<72x8xf32, #tpu.memory_space<vmem>>, vector<8x8xf32>
      %cst_29 = arith.constant dense<0.000000e+00> : vector<12x8xf32>
      %47 = tpu.matmul %45, %46, %cst_29 {dimension_numbers = #tpu.dot_dimension_numbers<[1], [0], [0], [1], [0, 0, 1, 1], [], []>} : vector<12x8xf32>, vector<8x8xf32>, vector<12x8xf32> -> vector<12x8xf32>
      %48 = arith.addf %38, %47 : vector<12x8xf32>
      %49 = vector.extract_strided_slice %44 {offsets = [1, 0], sizes = [12, 8], strides = [1, 1]} : vector<14x8xf32> to vector<12x8xf32>
      %c56 = arith.constant 56 : index
      %c0_30 = arith.constant 0 : index
      %50 = vector.load %arg3[%c56, %c0_30] : memref<72x8xf32, #tpu.memory_space<vmem>>, vector<8x8xf32>
      %cst_31 = arith.constant dense<0.000000e+00> : vector<12x8xf32>
      %51 = tpu.matmul %49, %50, %cst_31 {dimension_numbers = #tpu.dot_dimension_numbers<[1], [0], [0], [1], [0, 0, 1, 1], [], []>} : vector<12x8xf32>, vector<8x8xf32>, vector<12x8xf32> -> vector<12x8xf32>
      %52 = arith.addf %48, %51 : vector<12x8xf32>
      %53 = vector.extract_strided_slice %44 {offsets = [2, 0], sizes = [12, 8], strides = [1, 1]} : vector<14x8xf32> to vector<12x8xf32>
      %c64 = arith.constant 64 : index
      %c0_32 = arith.constant 0 : index
      %54 = vector.load %arg3[%c64, %c0_32] : memref<72x8xf32, #tpu.memory_space<vmem>>, vector<8x8xf32>
      %cst_33 = arith.constant dense<0.000000e+00> : vector<12x8xf32>
      %55 = tpu.matmul %53, %54, %cst_33 {dimension_numbers = #tpu.dot_dimension_numbers<[1], [0], [0], [1], [0, 0, 1, 1], [], []>} : vector<12x8xf32>, vector<8x8xf32>, vector<12x8xf32> -> vector<12x8xf32>
      %56 = arith.addf %52, %55 : vector<12x8xf32>
      %57 = arith.addf %56, %2 : vector<12x8xf32>
      %cst_34 = arith.constant 0.000000e+00 : f32
      %58 = vector.broadcast %cst_34 : f32 to vector<12x8xf32>
      %59 = arith.maximumf %57, %58 : vector<12x8xf32>
      %c0_35 = arith.constant 0 : index
      %60 = arith.index_cast %arg6 : i32 to index
      %c0_36 = arith.constant 0 : index
      %c0_37 = arith.constant 0 : index
      %61 = vector.load %arg5[%c0_35, %60, %c0_36, %c0_37] : memref<1x12x12x8xf32, #tpu.memory_space<vmem>>, vector<1x1x12x8xf32>
      %62 = vector.shape_cast %61 : vector<1x1x12x8xf32> to vector<12x8xf32>
      %63 = vector.shape_cast %59 : vector<12x8xf32> to vector<1x1x12x8xf32>
      tpu.vector_store %arg5[%c0_35, %60, %c0_36, %c0_37], %63 {strides = array<i32>} : memref<1x12x12x8xf32, #tpu.memory_space<vmem>>, vector<1x1x12x8xf32>,
    }
    %c12_i32_1 = arith.constant 12 : i32
    return
  }
  func.func @transform_0(%arg0: i32, %arg1: i32) -> (i32, i32, i32, i32) {
    %c0_i32 = arith.constant 0 : i32
    %c0_i32_0 = arith.constant 0 : i32
    %c0_i32_1 = arith.constant 0 : i32
    %c0_i32_2 = arith.constant 0 : i32
    return %arg0, %c0_i32, %c0_i32_0, %c0_i32_1 : i32, i32, i32, i32
  }
  func.func @transform_1(%arg0: i32, %arg1: i32) -> (i32, i32) {
    %c0_i32 = arith.constant 0 : i32
    %c0_i32_0 = arith.constant 0 : i32
    %c0_i32_1 = arith.constant 0 : i32
    return %c0_i32, %c0_i32_0 : i32, i32
  }
  func.func @transform_2(%arg0: i32, %arg1: i32) -> (i32, i32) {
    %c0_i32 = arith.constant 0 : i32
    %c0_i32_0 = arith.constant 0 : i32
    %c0_i32_1 = arith.constant 0 : i32
    return %c0_i32, %c0_i32_0 : i32, i32
  }
  func.func @transform_3(%arg0: i32, %arg1: i32) -> (i32, i32, i32, i32) {
    %c0_i32 = arith.constant 0 : i32
    %c0_i32_0 = arith.constant 0 : i32
    %c0_i32_1 = arith.constant 0 : i32
    return %arg0, %arg1, %c0_i32, %c0_i32_0 : i32, i32, i32, i32
  }
}

module attributes {stable_mosaic.version = 11 : i64} {
  func.func @kernel(%arg0: i32, %arg1: i32, %arg2: memref<1x18x18x2xf32, #tpu.memory_space<vmem>>, %arg3: memref<1x16x16x2xf32, #tpu.memory_space<vmem>>, %arg4: memref<36x8xf32, #tpu.memory_space<vmem>>, %arg5: memref<1x8xf32, #tpu.memory_space<vmem>>, %arg6: memref<1x14x14x8xf32, #tpu.memory_space<vmem>>) attributes {dimension_semantics = [#tpu.dimension_semantics<parallel>, #tpu.dimension_semantics<parallel>], iteration_bounds = array<i64: 2, 1>, scalar_prefetch = 0 : i64, scratch_operands = 0 : i64, tpu.core_type = #tpu.core_type<tc>, window_params = [{transform_indices = @transform_0, window_bounds = array<i64: 1, 18, 18, 2>}, {transform_indices = @transform_1, window_bounds = array<i64: 1, 16, 16, 2>}, {pipeline_mode = #tpu.pipeline_mode<synchronous>, transform_indices = @transform_2, window_bounds = array<i64: 36, 8>}, {pipeline_mode = #tpu.pipeline_mode<synchronous>, transform_indices = @transform_3, window_bounds = array<i64: 1, 8>}, {transform_indices = @transform_4, window_bounds = array<i64: 1, 14, 14, 8>}]} {
    %c0 = arith.constant 0 : index
    %c0_0 = arith.constant 0 : index
    %0 = vector.load %arg5[%c0, %c0_0] : memref<1x8xf32, #tpu.memory_space<vmem>>, vector<1x8xf32>
    %1 = vector.shape_cast %0 : vector<1x8xf32> to vector<1x8xf32>
    %2 = vector.broadcast %1 : vector<1x8xf32> to vector<14x8xf32>
    %c0_i32 = arith.constant 0 : i32
    %c14_i32 = arith.constant 14 : i32
    %3 = arith.addi %c0_i32, %c14_i32 : i32
    %c1_i32 = arith.constant 1 : i32
    scf.for %arg7 = %c0_i32 to %3 step %c1_i32  : i32 {
      %c1_i32_2 = arith.constant 1 : i32
      %4 = arith.addi %c1_i32_2, %arg7 : i32
      %c0_i32_3 = arith.constant 0 : i32
      %5 = arith.addi %4, %c0_i32_3 : i32
      %c0_4 = arith.constant 0 : index
      %6 = arith.index_cast %5 : i32 to index
      %c0_5 = arith.constant 0 : index
      %c0_6 = arith.constant 0 : index
      %7 = vector.load %arg2[%c0_4, %6, %c0_5, %c0_6] : memref<1x18x18x2xf32, #tpu.memory_space<vmem>>, vector<1x1x18x2xf32>
      %8 = vector.shape_cast %7 : vector<1x1x18x2xf32> to vector<1x18x2xf32>
      %9 = vector.shape_cast %8 : vector<1x18x2xf32> to vector<18x2xf32>
      %10 = vector.extract_strided_slice %9 {offsets = [1, 0], sizes = [14, 2], strides = [1, 1]} : vector<18x2xf32> to vector<14x2xf32>
      %c0_7 = arith.constant 0 : index
      %c0_8 = arith.constant 0 : index
      %11 = vector.load %arg4[%c0_7, %c0_8] : memref<36x8xf32, #tpu.memory_space<vmem>>, vector<2x8xf32>
      %cst = arith.constant dense<0.000000e+00> : vector<14x8xf32>
      %12 = tpu.matmul %10, %11, %cst {dimension_numbers = #tpu.dot_dimension_numbers<[1], [0], [0], [1], [0, 0, 1, 1], [], []>} : vector<14x2xf32>, vector<2x8xf32>, vector<14x8xf32> -> vector<14x8xf32>
      %13 = vector.extract_strided_slice %9 {offsets = [2, 0], sizes = [14, 2], strides = [1, 1]} : vector<18x2xf32> to vector<14x2xf32>
      %c2 = arith.constant 2 : index
      %c0_9 = arith.constant 0 : index
      %14 = vector.load %arg4[%c2, %c0_9] : memref<36x8xf32, #tpu.memory_space<vmem>>, vector<2x8xf32>
      %cst_10 = arith.constant dense<0.000000e+00> : vector<14x8xf32>
      %15 = tpu.matmul %13, %14, %cst_10 {dimension_numbers = #tpu.dot_dimension_numbers<[1], [0], [0], [1], [0, 0, 1, 1], [], []>} : vector<14x2xf32>, vector<2x8xf32>, vector<14x8xf32> -> vector<14x8xf32>
      %16 = arith.addf %12, %15 : vector<14x8xf32>
      %17 = vector.extract_strided_slice %9 {offsets = [3, 0], sizes = [14, 2], strides = [1, 1]} : vector<18x2xf32> to vector<14x2xf32>
      %c4 = arith.constant 4 : index
      %c0_11 = arith.constant 0 : index
      %18 = vector.load %arg4[%c4, %c0_11] : memref<36x8xf32, #tpu.memory_space<vmem>>, vector<2x8xf32>
      %cst_12 = arith.constant dense<0.000000e+00> : vector<14x8xf32>
      %19 = tpu.matmul %17, %18, %cst_12 {dimension_numbers = #tpu.dot_dimension_numbers<[1], [0], [0], [1], [0, 0, 1, 1], [], []>} : vector<14x2xf32>, vector<2x8xf32>, vector<14x8xf32> -> vector<14x8xf32>
      %20 = arith.addf %16, %19 : vector<14x8xf32>
      %c1_i32_13 = arith.constant 1 : i32
      %21 = arith.addi %c1_i32_13, %arg7 : i32
      %c1_i32_14 = arith.constant 1 : i32
      %22 = arith.addi %21, %c1_i32_14 : i32
      %c0_15 = arith.constant 0 : index
      %23 = arith.index_cast %22 : i32 to index
      %c0_16 = arith.constant 0 : index
      %c0_17 = arith.constant 0 : index
      %24 = vector.load %arg2[%c0_15, %23, %c0_16, %c0_17] : memref<1x18x18x2xf32, #tpu.memory_space<vmem>>, vector<1x1x18x2xf32>
      %25 = vector.shape_cast %24 : vector<1x1x18x2xf32> to vector<1x18x2xf32>
      %26 = vector.shape_cast %25 : vector<1x18x2xf32> to vector<18x2xf32>
      %27 = vector.extract_strided_slice %26 {offsets = [1, 0], sizes = [14, 2], strides = [1, 1]} : vector<18x2xf32> to vector<14x2xf32>
      %c6 = arith.constant 6 : index
      %c0_18 = arith.constant 0 : index
      %28 = vector.load %arg4[%c6, %c0_18] : memref<36x8xf32, #tpu.memory_space<vmem>>, vector<2x8xf32>
      %cst_19 = arith.constant dense<0.000000e+00> : vector<14x8xf32>
      %29 = tpu.matmul %27, %28, %cst_19 {dimension_numbers = #tpu.dot_dimension_numbers<[1], [0], [0], [1], [0, 0, 1, 1], [], []>} : vector<14x2xf32>, vector<2x8xf32>, vector<14x8xf32> -> vector<14x8xf32>
      %30 = arith.addf %20, %29 : vector<14x8xf32>
      %31 = vector.extract_strided_slice %26 {offsets = [2, 0], sizes = [14, 2], strides = [1, 1]} : vector<18x2xf32> to vector<14x2xf32>
      %c8 = arith.constant 8 : index
      %c0_20 = arith.constant 0 : index
      %32 = vector.load %arg4[%c8, %c0_20] : memref<36x8xf32, #tpu.memory_space<vmem>>, vector<2x8xf32>
      %cst_21 = arith.constant dense<0.000000e+00> : vector<14x8xf32>
      %33 = tpu.matmul %31, %32, %cst_21 {dimension_numbers = #tpu.dot_dimension_numbers<[1], [0], [0], [1], [0, 0, 1, 1], [], []>} : vector<14x2xf32>, vector<2x8xf32>, vector<14x8xf32> -> vector<14x8xf32>
      %34 = arith.addf %30, %33 : vector<14x8xf32>
      %35 = vector.extract_strided_slice %26 {offsets = [3, 0], sizes = [14, 2], strides = [1, 1]} : vector<18x2xf32> to vector<14x2xf32>
      %c10 = arith.constant 10 : index
      %c0_22 = arith.constant 0 : index
      %36 = vector.load %arg4[%c10, %c0_22] : memref<36x8xf32, #tpu.memory_space<vmem>>, vector<2x8xf32>
      %cst_23 = arith.constant dense<0.000000e+00> : vector<14x8xf32>
      %37 = tpu.matmul %35, %36, %cst_23 {dimension_numbers = #tpu.dot_dimension_numbers<[1], [0], [0], [1], [0, 0, 1, 1], [], []>} : vector<14x2xf32>, vector<2x8xf32>, vector<14x8xf32> -> vector<14x8xf32>
      %38 = arith.addf %34, %37 : vector<14x8xf32>
      %c1_i32_24 = arith.constant 1 : i32
      %39 = arith.addi %c1_i32_24, %arg7 : i32
      %c2_i32 = arith.constant 2 : i32
      %40 = arith.addi %39, %c2_i32 : i32
      %c0_25 = arith.constant 0 : index
      %41 = arith.index_cast %40 : i32 to index
      %c0_26 = arith.constant 0 : index
      %c0_27 = arith.constant 0 : index
      %42 = vector.load %arg2[%c0_25, %41, %c0_26, %c0_27] : memref<1x18x18x2xf32, #tpu.memory_space<vmem>>, vector<1x1x18x2xf32>
      %43 = vector.shape_cast %42 : vector<1x1x18x2xf32> to vector<1x18x2xf32>
      %44 = vector.shape_cast %43 : vector<1x18x2xf32> to vector<18x2xf32>
      %45 = vector.extract_strided_slice %44 {offsets = [1, 0], sizes = [14, 2], strides = [1, 1]} : vector<18x2xf32> to vector<14x2xf32>
      %c12 = arith.constant 12 : index
      %c0_28 = arith.constant 0 : index
      %46 = vector.load %arg4[%c12, %c0_28] : memref<36x8xf32, #tpu.memory_space<vmem>>, vector<2x8xf32>
      %cst_29 = arith.constant dense<0.000000e+00> : vector<14x8xf32>
      %47 = tpu.matmul %45, %46, %cst_29 {dimension_numbers = #tpu.dot_dimension_numbers<[1], [0], [0], [1], [0, 0, 1, 1], [], []>} : vector<14x2xf32>, vector<2x8xf32>, vector<14x8xf32> -> vector<14x8xf32>
      %48 = arith.addf %38, %47 : vector<14x8xf32>
      %49 = vector.extract_strided_slice %44 {offsets = [2, 0], sizes = [14, 2], strides = [1, 1]} : vector<18x2xf32> to vector<14x2xf32>
      %c14 = arith.constant 14 : index
      %c0_30 = arith.constant 0 : index
      %50 = vector.load %arg4[%c14, %c0_30] : memref<36x8xf32, #tpu.memory_space<vmem>>, vector<2x8xf32>
      %cst_31 = arith.constant dense<0.000000e+00> : vector<14x8xf32>
      %51 = tpu.matmul %49, %50, %cst_31 {dimension_numbers = #tpu.dot_dimension_numbers<[1], [0], [0], [1], [0, 0, 1, 1], [], []>} : vector<14x2xf32>, vector<2x8xf32>, vector<14x8xf32> -> vector<14x8xf32>
      %52 = arith.addf %48, %51 : vector<14x8xf32>
      %53 = vector.extract_strided_slice %44 {offsets = [3, 0], sizes = [14, 2], strides = [1, 1]} : vector<18x2xf32> to vector<14x2xf32>
      %c16 = arith.constant 16 : index
      %c0_32 = arith.constant 0 : index
      %54 = vector.load %arg4[%c16, %c0_32] : memref<36x8xf32, #tpu.memory_space<vmem>>, vector<2x8xf32>
      %cst_33 = arith.constant dense<0.000000e+00> : vector<14x8xf32>
      %55 = tpu.matmul %53, %54, %cst_33 {dimension_numbers = #tpu.dot_dimension_numbers<[1], [0], [0], [1], [0, 0, 1, 1], [], []>} : vector<14x2xf32>, vector<2x8xf32>, vector<14x8xf32> -> vector<14x8xf32>
      %56 = arith.addf %52, %55 : vector<14x8xf32>
      %c0_i32_34 = arith.constant 0 : i32
      %57 = arith.addi %c0_i32_34, %arg7 : i32
      %c0_i32_35 = arith.constant 0 : i32
      %58 = arith.addi %57, %c0_i32_35 : i32
      %c0_36 = arith.constant 0 : index
      %59 = arith.index_cast %58 : i32 to index
      %c0_37 = arith.constant 0 : index
      %c0_38 = arith.constant 0 : index
      %60 = vector.load %arg3[%c0_36, %59, %c0_37, %c0_38] : memref<1x16x16x2xf32, #tpu.memory_space<vmem>>, vector<1x1x16x2xf32>
      %61 = vector.shape_cast %60 : vector<1x1x16x2xf32> to vector<1x16x2xf32>
      %62 = vector.shape_cast %61 : vector<1x16x2xf32> to vector<16x2xf32>
      %63 = vector.extract_strided_slice %62 {offsets = [0, 0], sizes = [14, 2], strides = [1, 1]} : vector<16x2xf32> to vector<14x2xf32>
      %c18 = arith.constant 18 : index
      %c0_39 = arith.constant 0 : index
      %64 = vector.load %arg4[%c18, %c0_39] : memref<36x8xf32, #tpu.memory_space<vmem>>, vector<2x8xf32>
      %cst_40 = arith.constant dense<0.000000e+00> : vector<14x8xf32>
      %65 = tpu.matmul %63, %64, %cst_40 {dimension_numbers = #tpu.dot_dimension_numbers<[1], [0], [0], [1], [0, 0, 1, 1], [], []>} : vector<14x2xf32>, vector<2x8xf32>, vector<14x8xf32> -> vector<14x8xf32>
      %66 = arith.addf %56, %65 : vector<14x8xf32>
      %67 = vector.extract_strided_slice %62 {offsets = [1, 0], sizes = [14, 2], strides = [1, 1]} : vector<16x2xf32> to vector<14x2xf32>
      %c20 = arith.constant 20 : index
      %c0_41 = arith.constant 0 : index
      %68 = vector.load %arg4[%c20, %c0_41] : memref<36x8xf32, #tpu.memory_space<vmem>>, vector<2x8xf32>
      %cst_42 = arith.constant dense<0.000000e+00> : vector<14x8xf32>
      %69 = tpu.matmul %67, %68, %cst_42 {dimension_numbers = #tpu.dot_dimension_numbers<[1], [0], [0], [1], [0, 0, 1, 1], [], []>} : vector<14x2xf32>, vector<2x8xf32>, vector<14x8xf32> -> vector<14x8xf32>
      %70 = arith.addf %66, %69 : vector<14x8xf32>
      %71 = vector.extract_strided_slice %62 {offsets = [2, 0], sizes = [14, 2], strides = [1, 1]} : vector<16x2xf32> to vector<14x2xf32>
      %c22 = arith.constant 22 : index
      %c0_43 = arith.constant 0 : index
      %72 = vector.load %arg4[%c22, %c0_43] : memref<36x8xf32, #tpu.memory_space<vmem>>, vector<2x8xf32>
      %cst_44 = arith.constant dense<0.000000e+00> : vector<14x8xf32>
      %73 = tpu.matmul %71, %72, %cst_44 {dimension_numbers = #tpu.dot_dimension_numbers<[1], [0], [0], [1], [0, 0, 1, 1], [], []>} : vector<14x2xf32>, vector<2x8xf32>, vector<14x8xf32> -> vector<14x8xf32>
      %74 = arith.addf %70, %73 : vector<14x8xf32>
      %c0_i32_45 = arith.constant 0 : i32
      %75 = arith.addi %c0_i32_45, %arg7 : i32
      %c1_i32_46 = arith.constant 1 : i32
      %76 = arith.addi %75, %c1_i32_46 : i32
      %c0_47 = arith.constant 0 : index
      %77 = arith.index_cast %76 : i32 to index
      %c0_48 = arith.constant 0 : index
      %c0_49 = arith.constant 0 : index
      %78 = vector.load %arg3[%c0_47, %77, %c0_48, %c0_49] : memref<1x16x16x2xf32, #tpu.memory_space<vmem>>, vector<1x1x16x2xf32>
      %79 = vector.shape_cast %78 : vector<1x1x16x2xf32> to vector<1x16x2xf32>
      %80 = vector.shape_cast %79 : vector<1x16x2xf32> to vector<16x2xf32>
      %81 = vector.extract_strided_slice %80 {offsets = [0, 0], sizes = [14, 2], strides = [1, 1]} : vector<16x2xf32> to vector<14x2xf32>
      %c24 = arith.constant 24 : index
      %c0_50 = arith.constant 0 : index
      %82 = vector.load %arg4[%c24, %c0_50] : memref<36x8xf32, #tpu.memory_space<vmem>>, vector<2x8xf32>
      %cst_51 = arith.constant dense<0.000000e+00> : vector<14x8xf32>
      %83 = tpu.matmul %81, %82, %cst_51 {dimension_numbers = #tpu.dot_dimension_numbers<[1], [0], [0], [1], [0, 0, 1, 1], [], []>} : vector<14x2xf32>, vector<2x8xf32>, vector<14x8xf32> -> vector<14x8xf32>
      %84 = arith.addf %74, %83 : vector<14x8xf32>
      %85 = vector.extract_strided_slice %80 {offsets = [1, 0], sizes = [14, 2], strides = [1, 1]} : vector<16x2xf32> to vector<14x2xf32>
      %c26 = arith.constant 26 : index
      %c0_52 = arith.constant 0 : index
      %86 = vector.load %arg4[%c26, %c0_52] : memref<36x8xf32, #tpu.memory_space<vmem>>, vector<2x8xf32>
      %cst_53 = arith.constant dense<0.000000e+00> : vector<14x8xf32>
      %87 = tpu.matmul %85, %86, %cst_53 {dimension_numbers = #tpu.dot_dimension_numbers<[1], [0], [0], [1], [0, 0, 1, 1], [], []>} : vector<14x2xf32>, vector<2x8xf32>, vector<14x8xf32> -> vector<14x8xf32>
      %88 = arith.addf %84, %87 : vector<14x8xf32>
      %89 = vector.extract_strided_slice %80 {offsets = [2, 0], sizes = [14, 2], strides = [1, 1]} : vector<16x2xf32> to vector<14x2xf32>
      %c28 = arith.constant 28 : index
      %c0_54 = arith.constant 0 : index
      %90 = vector.load %arg4[%c28, %c0_54] : memref<36x8xf32, #tpu.memory_space<vmem>>, vector<2x8xf32>
      %cst_55 = arith.constant dense<0.000000e+00> : vector<14x8xf32>
      %91 = tpu.matmul %89, %90, %cst_55 {dimension_numbers = #tpu.dot_dimension_numbers<[1], [0], [0], [1], [0, 0, 1, 1], [], []>} : vector<14x2xf32>, vector<2x8xf32>, vector<14x8xf32> -> vector<14x8xf32>
      %92 = arith.addf %88, %91 : vector<14x8xf32>
      %c0_i32_56 = arith.constant 0 : i32
      %93 = arith.addi %c0_i32_56, %arg7 : i32
      %c2_i32_57 = arith.constant 2 : i32
      %94 = arith.addi %93, %c2_i32_57 : i32
      %c0_58 = arith.constant 0 : index
      %95 = arith.index_cast %94 : i32 to index
      %c0_59 = arith.constant 0 : index
      %c0_60 = arith.constant 0 : index
      %96 = vector.load %arg3[%c0_58, %95, %c0_59, %c0_60] : memref<1x16x16x2xf32, #tpu.memory_space<vmem>>, vector<1x1x16x2xf32>
      %97 = vector.shape_cast %96 : vector<1x1x16x2xf32> to vector<1x16x2xf32>
      %98 = vector.shape_cast %97 : vector<1x16x2xf32> to vector<16x2xf32>
      %99 = vector.extract_strided_slice %98 {offsets = [0, 0], sizes = [14, 2], strides = [1, 1]} : vector<16x2xf32> to vector<14x2xf32>
      %c30 = arith.constant 30 : index
      %c0_61 = arith.constant 0 : index
      %100 = vector.load %arg4[%c30, %c0_61] : memref<36x8xf32, #tpu.memory_space<vmem>>, vector<2x8xf32>
      %cst_62 = arith.constant dense<0.000000e+00> : vector<14x8xf32>
      %101 = tpu.matmul %99, %100, %cst_62 {dimension_numbers = #tpu.dot_dimension_numbers<[1], [0], [0], [1], [0, 0, 1, 1], [], []>} : vector<14x2xf32>, vector<2x8xf32>, vector<14x8xf32> -> vector<14x8xf32>
      %102 = arith.addf %92, %101 : vector<14x8xf32>
      %103 = vector.extract_strided_slice %98 {offsets = [1, 0], sizes = [14, 2], strides = [1, 1]} : vector<16x2xf32> to vector<14x2xf32>
      %c32 = arith.constant 32 : index
      %c0_63 = arith.constant 0 : index
      %104 = vector.load %arg4[%c32, %c0_63] : memref<36x8xf32, #tpu.memory_space<vmem>>, vector<2x8xf32>
      %cst_64 = arith.constant dense<0.000000e+00> : vector<14x8xf32>
      %105 = tpu.matmul %103, %104, %cst_64 {dimension_numbers = #tpu.dot_dimension_numbers<[1], [0], [0], [1], [0, 0, 1, 1], [], []>} : vector<14x2xf32>, vector<2x8xf32>, vector<14x8xf32> -> vector<14x8xf32>
      %106 = arith.addf %102, %105 : vector<14x8xf32>
      %107 = vector.extract_strided_slice %98 {offsets = [2, 0], sizes = [14, 2], strides = [1, 1]} : vector<16x2xf32> to vector<14x2xf32>
      %c34 = arith.constant 34 : index
      %c0_65 = arith.constant 0 : index
      %108 = vector.load %arg4[%c34, %c0_65] : memref<36x8xf32, #tpu.memory_space<vmem>>, vector<2x8xf32>
      %cst_66 = arith.constant dense<0.000000e+00> : vector<14x8xf32>
      %109 = tpu.matmul %107, %108, %cst_66 {dimension_numbers = #tpu.dot_dimension_numbers<[1], [0], [0], [1], [0, 0, 1, 1], [], []>} : vector<14x2xf32>, vector<2x8xf32>, vector<14x8xf32> -> vector<14x8xf32>
      %110 = arith.addf %106, %109 : vector<14x8xf32>
      %111 = arith.addf %110, %2 : vector<14x8xf32>
      %cst_67 = arith.constant 0.000000e+00 : f32
      %112 = vector.broadcast %cst_67 : f32 to vector<14x8xf32>
      %113 = arith.maximumf %111, %112 : vector<14x8xf32>
      %c0_68 = arith.constant 0 : index
      %114 = arith.index_cast %arg7 : i32 to index
      %c0_69 = arith.constant 0 : index
      %c0_70 = arith.constant 0 : index
      %115 = vector.load %arg6[%c0_68, %114, %c0_69, %c0_70] : memref<1x14x14x8xf32, #tpu.memory_space<vmem>>, vector<1x1x14x8xf32>
      %116 = vector.shape_cast %115 : vector<1x1x14x8xf32> to vector<14x8xf32>
      %117 = vector.shape_cast %113 : vector<14x8xf32> to vector<1x1x14x8xf32>
      tpu.vector_store %arg6[%c0_68, %114, %c0_69, %c0_70], %117 {strides = array<i32>} : memref<1x14x14x8xf32, #tpu.memory_space<vmem>>, vector<1x1x14x8xf32>,
    }
    %c14_i32_1 = arith.constant 14 : i32
    return
  }
  func.func @transform_0(%arg0: i32, %arg1: i32) -> (i32, i32, i32, i32) {
    %c0_i32 = arith.constant 0 : i32
    %c0_i32_0 = arith.constant 0 : i32
    %c0_i32_1 = arith.constant 0 : i32
    %c0_i32_2 = arith.constant 0 : i32
    return %arg0, %c0_i32, %c0_i32_0, %c0_i32_1 : i32, i32, i32, i32
  }
  func.func @transform_1(%arg0: i32, %arg1: i32) -> (i32, i32, i32, i32) {
    %c0_i32 = arith.constant 0 : i32
    %c0_i32_0 = arith.constant 0 : i32
    %c0_i32_1 = arith.constant 0 : i32
    %c0_i32_2 = arith.constant 0 : i32
    return %arg0, %c0_i32, %c0_i32_0, %c0_i32_1 : i32, i32, i32, i32
  }
  func.func @transform_2(%arg0: i32, %arg1: i32) -> (i32, i32) {
    %c0_i32 = arith.constant 0 : i32
    %c0_i32_0 = arith.constant 0 : i32
    %c0_i32_1 = arith.constant 0 : i32
    return %c0_i32, %c0_i32_0 : i32, i32
  }
  func.func @transform_3(%arg0: i32, %arg1: i32) -> (i32, i32) {
    %c0_i32 = arith.constant 0 : i32
    %c0_i32_0 = arith.constant 0 : i32
    %c0_i32_1 = arith.constant 0 : i32
    return %c0_i32, %c0_i32_0 : i32, i32
  }
  func.func @transform_4(%arg0: i32, %arg1: i32) -> (i32, i32, i32, i32) {
    %c0_i32 = arith.constant 0 : i32
    %c0_i32_0 = arith.constant 0 : i32
    %c0_i32_1 = arith.constant 0 : i32
    return %arg0, %arg1, %c0_i32, %c0_i32_0 : i32, i32, i32, i32
  }
}

</mosaic_0001>

<bundles_post_ra>
// kernel: tile.8
= control target key start
LH: loop header
LB: loop body
LE: loop exit
PB: predicated region body
PF: predicated region fallthrough
CT: control target
= control target key end

     0   :  { %2 = vsyncpa [#allocation1], 0  ;;  %s44_s6 = smov [#allocation0]   ;;  %s70_s0 = inlined_call_operand.hbm [shape: f32[2], index: 0, kind: input, shape index: {}]   ;;  %s71_s1 = inlined_call_operand.vmem [shape: f32[4,2], index: 1, kind: output, shape index: {}]  }
   0x1   :  { %s9_s7 = sshll.u32 %s44_s6, 4  ;;  %s20_s10 = scalar_lea.hbm %s70_s0, 16  ;;  %s10_s7 = int_to_ptr.vmem [resolvable:$true] %s9_s7 }
   0x2   :  { %p21_p0 = scmp.ne.s32.totalorder %s70_s0, %s20_s10  ;;  %p24_p1 = scmp.lt.u32.totalorder %s20_s10, %s70_s0 }
   0x4   :  { %p26_p2 = pnand %p24_p1, %p21_p0 }
   0x6   :  { %29 = shalt.err (!%p26_p2)
}
   0x7   :  { %s30_s15 = scalar_lea.vmem %s10_s7, 16  ;;  %s34_s16 = scalar_lea.vmem %s10_s7, 32 }
   0x8   :  { %p31_p3 = scmp.ne.s32.totalorder %s10_s7, %s30_s15  ;;  %p35_p4 = scmp.lt.s32.totalorder %s10_s7, %s10_s7 }
   0x9   :  { %p36_p5 = scmp.lt.s32.totalorder %s34_s16, %s30_s15 }
   0xb   :  { %p37_p6 = por %p36_p5, %p35_p4 }
   0xd   :  { %p38_p7 = pnand %p37_p6, %p31_p3 }
   0xf   :  { %41 = shalt.err (!%p38_p7)
}
  0x10   :  { %12 = dma.hbm_to_vmem [thread:$0]  %s70_s0, 16, %s10_s7, [#allocation1]  }
  0x11   :  { %42 = dma.done.wait [#allocation1], 16  }
  0x12   :  { %43 = vsyncadd [#allocation1], 4294967280  ;;  %v16_v0 = vld [vmem:[#allocation0] ss:$0 sm:$0xff] }
  0x13   :  { %17 = vst [vmem:[%s71_s1] sm:$0xf] %v16_v0 }
  0x14   :  { %18 = vsyncpa [#allocation1], 1 }

// kernel: tile.9
= control target key start
LH: loop header
LB: loop body
LE: loop exit
PB: predicated region body
PF: predicated region fallthrough
CT: control target
= control target key end

     0   :  { %vm7_vm0 = vcmask 15360   ;;  %s37_s8 = smov 2   ;;  %s38_s9 = smov 4   ;;  %vm13_vm1 = vcmask 64560   ;;  %vm19_vm2 = vcmask 48160   ;;  %vm25_vm3 = vcmask 31760   ;;  %s55_s0 = inlined_call_operand.vmem [shape: f32[4,2], index: 0, kind: input, shape index: {}]   ;;  %s56_s1 = inlined_call_operand.vmem [shape: f32[1,8], index: 1, kind: output, shape index: {}]  }
   0x1   :  { %v4_v0 = vld [vmem:[%s55_s0] sm:$0xf]  ;;  %s36_s0 = smov 6  }
   0x2   :  { %5 = vst [vmem:[#allocation1] sm:$0xf] %v4_v0 }
   0x9   :  { %v10_v1 = vld [vmem:[#allocation1 + $0x3] sm:$0x1]   ;;  %v22_v2 = vld [vmem:[#allocation1 + $0x1] sm:$0x1]   ;;  %v6_v3 = vld [vmem:[#allocation1] sm:$0x1]  }
   0xa   :  { %11 = vrot.lane.b32.xlu0 %v10_v1, %s36_s0  ;;  %23 = vrot.lane.b32.xlu1 %v22_v2, %s37_s8  ;;  %v16_v4 = vld [vmem:[#allocation1 + $0x2] sm:$0x1]   ;;  %8 = vst.msk [vmem:[#allocation0] sm:$0x1] %vm7_vm0, %v6_v3  }
   0xe   :  { %17 = vrot.lane.b32.xlu0 %v16_v4, %s38_s9 }
  0x7c   :  { %v12_v5 = vpop.permute.xlu0 %11   ;;  %v24_v6 = vpop.permute.xlu1 %23  }
  0x7d   :  { %14 = vst.msk [vmem:[#allocation0] sm:$0x1] %vm13_vm1, %v12_v5  }
  0x80   :  { %v18_v7 = vpop.permute.xlu0 %17  }
  0x81   :  { %20 = vst.msk [vmem:[#allocation0] sm:$0x1] %vm19_vm2, %v18_v7  }
  0x82   :  { %26 = vst.msk [vmem:[#allocation0] sm:$0x1] %vm25_vm3, %v24_v6  }
  0x89   :  { %v30_v8 = vld [vmem:[#allocation0] sm:$0x1] }
  0x8a   :  { %32 = vst [vmem:[%s56_s1] sm:$0x1] %v30_v8 }

// kernel: up_step.3
= control target key start
LH: loop header
LB: loop body
LE: loop exit
PB: predicated region body
PF: predicated region fallthrough
CT: control target
= control target key end

     0   :  { %s630_s12 = smov 0   ;;  %s632_s13 = smov 0   ;;  %s711_s0 = inlined_call_operand.vmem [shape: f32[2,8,8,4], index: 0, kind: input, shape index: {}]   ;;  %s712_s1 = inlined_call_operand.vmem [shape: f32[4,8], index: 1, kind: input, shape index: {}]   ;;  %s713_s2 = inlined_call_operand.vmem [shape: f32[1,8], index: 2, kind: input, shape index: {}]   ;;  %s714_s3 = inlined_call_operand.vmem [shape: f32[2,8,2,8,4], index: 3, kind: output, shape index: {}]  }
   0x1   :  { %s634_s14 = smov 0  }
   0x2 LB: > { %s25_s15 = sadd.s32 1, %s603_s13  ;;  %p508_p0 = scmp.ge.s32.totalorder %s607_s14, 1  ;;  %s607_s14 = sphi %s634_s14, %s13_s14   ;;  %s603_s13 = sphi %s632_s13, %s716_s13   ;;  %s599_s12 = sphi %s630_s12, %s715_s12  }
   0x3   : > { %p27_p1 = scmp.ge.s32.totalorder %s25_s15, 2  ;;  %p158_p2 = scmp.lt.s32.totalorder %s607_s14, 3 }
   0x5   : > { %s718_s15 = smov (%p27_p1, %s25_s15), 0  ;;  %p159_p3 = pnand %p508_p0, %p158_p2 }
   0x6   : > { %v212_v0 = vld [vmem:[%s712_s1] sm:$0xf] (!%p159_p3)  ;;  %vm253_vm0 = vcmask (!%p159_p3), 1043456   ;;  %p192_p4 = scmp.lt.s32.totalorder (!%p159_p3), %s599_s12, 1  ;;  %vm228_vm1 = vcmask (!%p159_p3), 31744   ;;  %s609_s28 = smov (!%p159_p3), 124  }
   0x7   : > { %162 = sbr.rel (%p159_p3) target bundleno = 362 (0x16a), region = 32  ;;  %544 = vmatprep.subr.msk.mxu0 (!%p159_p3), %vm253_vm0, %v212_v0  ;;  %558 = vmatprep.subr.msk.mxu1 (!%p159_p3), %vm253_vm0, %v212_v0  ;;  %v513_v9 = vld [vmem:[%s713_s2] ss:$0 sm:$0xff] (!%p159_p3) }
   0x8   : > { %545 = vmatpush3.msk.msra.mxu0 (!%p159_p3), %vm253_vm0, %v212_v0  ;;  %559 = vmatpush3.msk.msra.mxu1 (!%p159_p3), %vm253_vm0, %v212_v0 }
   0xe   : > { %s720_s12 = smov (!%p192_p4, %s599_s12), 1 }
   0xf   : > { %s533_s18 = sshll.u32 %s720_s12, 6  ;;  %s534_s22 = sshll.u32 %s720_s12, 7 }
  0x10   : > { %s199_s21 = scalar_lea.vmem %s711_s0, %s533_s18  ;;  %s668_s27 = scalar_lea.vmem %s714_s3, %s534_s22 }
  0x11   : > { %v214_v1 = vld [vmem:[%s199_s21] sm:$0xff]  ;;  %v215_v3 = vld [vmem:[%s199_s21 + $0x8] sm:$0xff]  ;;  %v216_v5 = vld [vmem:[%s199_s21 + $0x10] sm:$0xff] }
  0x12   : > { %v218_v2 = vld [vmem:[%s199_s21 + $0x20] sm:$0xff]  ;;  %546 = vmatprep.mubr.msk.f32.mxu0 %vm228_vm1, %v214_v1  ;;  %v219_v4 = vld [vmem:[%s199_s21 + $0x28] sm:$0xff]  ;;  %v220_v6 = vld [vmem:[%s199_s21 + $0x30] sm:$0xff] }
  0x13   : > { %552 = vmatprep.mubr.msk.f32.mxu1 %vm228_vm1, %v218_v2  ;;  %547 = vmatmul.mubr.msk.f32.vlgmr.msra.gmra.mrb[0].mxu0 %vm228_vm1, %v215_v3  ;;  %v217_v7 = vld [vmem:[%s199_s21 + $0x18] sm:$0xff] }
  0x14   : > { %553 = vmatmul.mubr.msk.f32.vlgmr.msra.gmra.mrb[0].mxu1 %vm228_vm1, %v219_v4  ;;  %549 = vmatprep.mubr.msk.f32.mxu0 %vm228_vm1, %v216_v5  ;;  %v221_v8 = vld [vmem:[%s199_s21 + $0x38] sm:$0xff] }
  0x15   : > { %555 = vmatprep.mubr.msk.f32.mxu1 %vm228_vm1, %v220_v6 }
  0x17   : > { %550 = vmatmul.mubr.msk.f32.gmra.mrb[2].mxu0 %vm228_vm1, %v217_v7 }
  0x18   : > { %556 = vmatmul.mubr.msk.f32.gmra.mrb[2].mxu1 %vm228_vm1, %v221_v8 }
  0xe6   : > { %v548_v10 = vpop.f32.mrb[0].mxu0 }
  0xe7   : > { %v554_v11 = vpop.f32.mrb[0].mxu1  ;;  %v329_v12 = vadd.f32 %v548_v10, %v513_v9  ;;  %v323_v14 = vpop.f32.mrb[1].mxu0 }
  0xe8   : > { %v349_v13 = vadd.f32 %v554_v11, %v513_v9  ;;  %v343_v15 = vpop.f32.mrb[1].mxu1  ;;  %v324_v16 = vadd.f32 %v513_v9, %v323_v14 }
  0xe9   : > { %v344_v17 = vadd.f32 %v513_v9, %v343_v15  ;;  %363 = vst.msk [vmem:[%s668_s27 + $0x10] sm:$0xff] %vm228_vm1, %v329_v12  ;;  %380 = vrot.lane.b32.xlu0 %v329_v12, %s609_s28 }
  0xea   : > { %367 = vst.msk [vmem:[%s668_s27 + $0x50] sm:$0xff] %vm228_vm1, %v349_v13  ;;  %388 = vrot.lane.b32.xlu1 %v349_v13, %s609_s28  ;;  %362 = vst.msk [vmem:[%s668_s27] sm:$0xff] %vm228_vm1, %v324_v16  ;;  %v551_v18 = vpop.f32.mrb[2].mxu0 }
  0xeb   : > { %366 = vst.msk [vmem:[%s668_s27 + $0x40] sm:$0xff] %vm228_vm1, %v344_v17  ;;  %v557_v19 = vpop.f32.mrb[2].mxu1  ;;  %v339_v20 = vadd.f32 %v551_v18, %v513_v9  ;;  %v333_v21 = vpop.f32.mrb[3].mxu0 }
  0xec   : > { %v359_v22 = vadd.f32 %v557_v19, %v513_v9  ;;  %v353_v23 = vpop.f32.mrb[3].mxu1  ;;  %v334_v24 = vadd.f32 %v513_v9, %v333_v21 }
  0xed   : > { %v354_v25 = vadd.f32 %v513_v9, %v353_v23  ;;  %365 = vst.msk [vmem:[%s668_s27 + $0x30] sm:$0xff] %vm228_vm1, %v339_v20  ;;  %378 = vrot.lane.b32.xlu0 %v324_v16, %s609_s28 }
  0xee   : > { %384 = vrot.lane.b32.xlu1 %v339_v20, %s609_s28  ;;  %369 = vst.msk [vmem:[%s668_s27 + $0x70] sm:$0xff] %vm228_vm1, %v359_v22  ;;  %364 = vst.msk [vmem:[%s668_s27 + $0x20] sm:$0xff] %vm228_vm1, %v334_v24 }
  0xef   : > { %368 = vst.msk [vmem:[%s668_s27 + $0x60] sm:$0xff] %vm228_vm1, %v354_v25 }
  0xf1   : > { %386 = vrot.lane.b32.xlu0 %v344_v17, %s609_s28 }
  0xf2   : > { %382 = vrot.lane.b32.xlu1 %v334_v24, %s609_s28 }
  0xf5   : > { %390 = vrot.lane.b32.xlu0 %v354_v25, %s609_s28 }
  0xf6   : > { %392 = vrot.lane.b32.xlu1 %v359_v22, %s609_s28 }
 0x15b   : > { %v381_v27 = vpop.permute.xlu0 %380 }
 0x15c   : > { %v389_v26 = vpop.permute.xlu1 %388  ;;  %524 = vst.msk [vmem:[%s668_s27 + $0x18] sm:$0xff] %vm228_vm1, %v381_v27 }
 0x15d   : > { %528 = vst.msk [vmem:[%s668_s27 + $0x58] sm:$0xff] %vm228_vm1, %v389_v26 }
 0x15f   : > { %v379_v29 = vpop.permute.xlu0 %378 }
 0x160   : > { %v385_v28 = vpop.permute.xlu1 %384  ;;  %523 = vst.msk [vmem:[%s668_s27 + $0x8] sm:$0xff] %vm228_vm1, %v379_v29 }
 0x161   : > { %526 = vst.msk [vmem:[%s668_s27 + $0x38] sm:$0xff] %vm228_vm1, %v385_v28 }
 0x163   : > { %v387_v31 = vpop.permute.xlu0 %386 }
 0x164   : > { %v383_v30 = vpop.permute.xlu1 %382  ;;  %527 = vst.msk [vmem:[%s668_s27 + $0x48] sm:$0xff] %vm228_vm1, %v387_v31 }
 0x165   : > { %525 = vst.msk [vmem:[%s668_s27 + $0x28] sm:$0xff] %vm228_vm1, %v383_v30 }
 0x167   : > { %v391_v33 = vpop.permute.xlu0 %390 }
 0x168   : > { %v393_v32 = vpop.permute.xlu1 %392  ;;  %529 = vst.msk [vmem:[%s668_s27 + $0x68] sm:$0xff] %vm228_vm1, %v391_v33 }
 0x169   : > { %530 = vst.msk [vmem:[%s668_s27 + $0x78] sm:$0xff] %vm228_vm1, %v393_v32 }
 0x16a PF: > { %s13_s14 = sadd.s32 1, %s607_s14   ;;  %s715_s12 = smov %s603_s13 }
 0x16b   : > { %p10_p5 = scmp.ge.s32.totalorder %s13_s14, 4   ;;  %s716_s13 = smov %s718_s15 }
 0x16d   :  { %12 = sbr.rel (!%p10_p5) target bundleno = 2 (0x2), region = 63 }

// kernel: up_step.5
= control target key start
LH: loop header
LB: loop body
LE: loop exit
PB: predicated region body
PF: predicated region fallthrough
CT: control target
= control target key end

     0   :  { %s1303_s12 = smov 0   ;;  %s1305_s13 = smov 0   ;;  %s1422_s0 = inlined_call_operand.vmem [shape: f32[2,14,14,8], index: 0, kind: input, shape index: {}]   ;;  %s1423_s1 = inlined_call_operand.vmem [shape: f32[72,8], index: 1, kind: input, shape index: {}]   ;;  %s1424_s2 = inlined_call_operand.vmem [shape: f32[1,8], index: 2, kind: input, shape index: {}]   ;;  %s1425_s3 = inlined_call_operand.vmem [shape: f32[2,12,12,8], index: 3, kind: output, shape index: {}]  }
   0x1   :  { %s1307_s14 = smov 0  }
   0x2 LB: > { %s25_s15 = sadd.s32 1, %s1273_s13  ;;  %p1098_p0 = scmp.ge.s32.totalorder %s1277_s14, 1  ;;  %s1277_s14 = sphi %s1307_s14, %s13_s14   ;;  %s1273_s13 = sphi %s1305_s13, %s1427_s13   ;;  %s1269_s12 = sphi %s1303_s12, %s1426_s12  }
   0x3   : > { %p27_p1 = scmp.ge.s32.totalorder %s25_s15, 2  ;;  %p151_p2 = scmp.lt.s32.totalorder %s1277_s14, 3 }
   0x5   : > { %s1429_s15 = smov (%p27_p1, %s25_s15), 0  ;;  %p152_p3 = pnand %p1098_p0, %p151_p2 }
   0x6   : > { %p180_p4 = scmp.lt.s32.totalorder (!%p152_p3), %s1269_s12, 1  ;;  %v1324_v0 = vld [vmem:[%s1424_s2] ss:$0 sm:$0xff] (!%p152_p3)  ;;  %s1336_s26 = smov (!%p152_p3), 0  }
   0x7   : > { %155 = sbr.rel (%p152_p3) target bundleno = 279 (0x117), region = 32 }
   0xe   : > { %s1431_s12 = smov (!%p180_p4, %s1269_s12), 1 }
   0xf   : > { %s1217_s18 = smul.u32 224, %s1431_s12 }
  0x10   : > { %s1218_s19 = smul.u32 192, %s1431_s12 }
  0x11   : > { %s1329_s22 = scalar_lea.vmem %s1422_s0, %s1217_s18 }
  0x12   : > { %s1334_s25 = scalar_lea.vmem %s1425_s3, %s1218_s19 }
  0x13 LB: >> { %v555_v1 = vld [vmem:[%s1423_s1 + $0x20] sm:$0xff]  ;;  %v214_v2 = vld [vmem:[%s1423_s1 + $0x8] sm:$0xff]  ;;  %s1102_s8 = sshll.u32 %s1281_s26, 4  ;;  %vm217_vm0 = vcmask 1046528   ;;  %vm221_vm1 = vcmask 64512   ;;  %vm381_vm2 = vcmask 1045504   ;;  %s1281_s26 = sphi %s1336_s26, %s208_s26  }
  0x14   : >> { %v640_v3 = vld [vmem:[%s1423_s1 + $0x28] sm:$0xff]  ;;  %1176 = vmatprep.subr.mxu0 %v555_v1  ;;  %1156 = vmatprep.subr.mxu1 %v214_v2  ;;  %v213_v4 = vld [vmem:[%s1423_s1] sm:$0xff]  ;;  %s1357_s9 = scalar_lea.vmem %s1329_s22, %s1102_s8  ;;  %v730_v18 = vld [vmem:[%s1423_s1 + $0x30] sm:$0xff]  ;;  %s988_s24 = scalar_lea.vmem %s1334_s25, %s1102_s8  ;;  %vm990_vm3 = vcmask 60416  }
  0x15   : >> { %1177 = vmatpush3.msra.mxu0 %v555_v1  ;;  %1157 = vmatpush3.msra.mxu1 %v214_v2  ;;  %v211_v5 = vld [vmem:[%s1357_s9] sm:$0xff]  ;;  %v212_v6 = vld [vmem:[%s1357_s9 + $0x8] sm:$0x3f]  ;;  %v1110_v7 = vld [vmem:[%s1357_s9 + $0x10] sm:$0xff]  ;;  %s208_s26 = sadd.s32 1, %s1281_s26  }
  0x16   : >> { %1181 = vmatprep.subr.mxu0 %v640_v3  ;;  %1161 = vmatprep.subr.mxu1 %v213_v4  ;;  %v218_v8 = vrot.slane %v211_v5, 1  ;;  %v219_v9 = vrot.slane %v212_v6, 1  ;;  %v1111_v10 = vld [vmem:[%s1357_s9 + $0x18] sm:$0x3f]  ;;  %v556_v11 = vrot.slane %v1110_v7, 1  ;;  %v641_v12 = vrot.slane %v1110_v7, 2 }
  0x17   : >> { %v557_v13 = vrot.slane %v1111_v10, 1  ;;  %v642_v14 = vrot.slane %v1111_v10, 2  ;;  %v380_v19 = vld [vmem:[%s1423_s1 + $0x10] sm:$0xff]  ;;  %v382_v20 = vrot.slane %v211_v5, 2  ;;  %v383_v21 = vrot.slane %v212_v6, 2  ;;  %v1119_v23 = vld [vmem:[%s1357_s9 + $0x20] sm:$0xff] }
  0x18   : >> { %v220_v15 = vsel %vm217_vm0, %v218_v8, %v219_v9  ;;  %v814_v24 = vld [vmem:[%s1423_s1 + $0x38] sm:$0xff]  ;;  %v1120_v26 = vld [vmem:[%s1357_s9 + $0x28] sm:$0x3f]  ;;  %v815_v27 = vrot.slane %v1119_v23, 1  ;;  %v899_v30 = vld [vmem:[%s1423_s1 + $0x40] sm:$0xff]  ;;  %v900_v31 = vrot.slane %v1119_v23, 2 }
  0x19   : >> { %1158 = vmatprep.mubr.msk.f32.mxu1 %vm221_vm1, %v220_v15  ;;  %v558_v16 = vsel %vm217_vm0, %v556_v11, %v557_v13  ;;  %v643_v17 = vsel %vm381_vm2, %v641_v12, %v642_v14  ;;  %v384_v22 = vsel %vm381_vm2, %v382_v20, %v383_v21  ;;  %v471_v25 = vld [vmem:[%s1423_s1 + $0x18] sm:$0xff]  ;;  %v816_v28 = vrot.slane %v1120_v26, 1  ;;  %p205_p5 = scmp.ge.s32.totalorder %s208_s26, 12  }
  0x1a   : >> { %1178 = vmatprep.mubr.msk.f32.mxu0 %vm221_vm1, %v558_v16  ;;  %1159 = vmatmul.mubr.msk.f32.vlgmr.msra.gmra.mrb[0].mxu1 %vm221_vm1, %v219_v9  ;;  %v901_v32 = vrot.slane %v1120_v26, 2 }
  0x1b   : >> { %1179 = vmatmul.mubr.msk.f32.vlgmr.msra.gmra.mrb[0].mxu0 %vm221_vm1, %v557_v13  ;;  %1162 = vmatpush3.msra.mxu1 %v213_v4  ;;  %v817_v29 = vsel %vm217_vm0, %v815_v27, %v816_v28 }
  0x1c   : >> { %1182 = vmatpush3.msra.mxu0 %v640_v3  ;;  %1163 = vmatprep.mubr.msk.f32.mxu1 %vm221_vm1, %v211_v5  ;;  %v902_v33 = vsel %vm381_vm2, %v900_v31, %v901_v32 }
  0x1d   : >> { %1183 = vmatprep.mubr.msk.f32.mxu0 %vm221_vm1, %v643_v17  ;;  %1186 = vmatprep.subr.mxu0 %v730_v18 }
  0x1e   : >> { %1166 = vmatprep.subr.mxu1 %v380_v19 }
  0x22   : >> { %1164 = vmatmul.mubr.msk.f32.vlgmr.msra.gmra.mrb[0].mxu1 %vm221_vm1, %v212_v6 }
  0x23   : >> { %1184 = vmatmul.mubr.msk.f32.vlgmr.msra.gmra.mrb[0].mxu0 %vm221_vm1, %v642_v14  ;;  %1167 = vmatpush3.msra.mxu1 %v380_v19 }
  0x24   : >> { %1187 = vmatpush3.msra.mxu0 %v730_v18  ;;  %1168 = vmatprep.mubr.msk.f32.mxu1 %vm221_vm1, %v384_v22 }
  0x25   : >> { %1188 = vmatprep.mubr.msk.f32.mxu0 %vm221_vm1, %v1119_v23  ;;  %1191 = vmatprep.subr.mxu0 %v814_v24 }
  0x26   : >> { %1171 = vmatprep.subr.mxu1 %v471_v25 }
  0x2a   : >> { %1169 = vmatmul.mubr.msk.f32.vlgmr.msra.gmra.mrb[0].mxu1 %vm221_vm1, %v383_v21 }
  0x2b   : >> { %1189 = vmatmul.mubr.msk.f32.vlgmr.msra.gmra.mrb[0].mxu0 %vm221_vm1, %v1120_v26  ;;  %1172 = vmatpush3.msra.mxu1 %v471_v25 }
  0x2c   : >> { %1192 = vmatpush3.msra.mxu0 %v814_v24  ;;  %1173 = vmatprep.mubr.msk.f32.mxu1 %vm221_vm1, %v1110_v7 }
  0x2d   : >> { %1193 = vmatprep.mubr.msk.f32.mxu0 %vm221_vm1, %v817_v29  ;;  %1196 = vmatprep.subr.mxu0 %v899_v30 }
  0x32   : >> { %1174 = vmatmul.mubr.msk.f32.vlgmr.msra.gmra.mrb[0].mxu1 %vm221_vm1, %v1111_v10 }
  0x33   : >> { %1194 = vmatmul.mubr.msk.f32.vlgmr.msra.gmra.mrb[0].mxu0 %vm221_vm1, %v816_v28 }
  0x34   : >> { %1197 = vmatpush3.msra.mxu0 %v899_v30  ;;  %1198 = vmatprep.mubr.msk.f32.mxu0 %vm221_vm1, %v902_v33 }
  0x3b   : >> { %1199 = vmatmul.mubr.msk.f32.vlgmr.msra.gmra.mrb[0].mxu0 %vm221_vm1, %v901_v32 }
 0x105   : >> { %v1175_v34 = vpop.f32.mrb[0].mxu1 }
 0x106   : >> { %v544_v35 = vpop.f32.mrb[1].mxu1 }
 0x10e   : >> { %v1200_v36 = vpop.f32.mrb[0].mxu0 }
 0x10f   : >> { %v1201_v37 = vadd.f32 %v1200_v36, %v1175_v34  ;;  %v973_v38 = vpop.f32.mrb[1].mxu0 }
 0x110   : >> { %v1202_v39 = vadd.f32 %v973_v38, %v544_v35  ;;  %207 = sbr.rel (!%p205_p5) target bundleno = 19 (0x13), region = 73 }
 0x111   : >> { %v985_v40 = vadd.f32 %v1201_v37, %v1324_v0 }
 0x112   : >> { %v984_v41 = vadd.f32 %v1202_v39, %v1324_v0 }
 0x113   : >> { %v987_v42 = vmax.f32 %v985_v40, 0.0 }
 0x114   : >> { %v986_v43 = vmax.f32 %v984_v41, 0.0 }
 0x115   : >> { %991 = vst.msk [vmem:[%s988_s24 + $0x8] sm:$0xf] %vm990_vm3, %v987_v42 }
 0x116   : >> { %989 = vst.msk [vmem:[%s988_s24] sm:$0xff] %vm221_vm1, %v986_v43 }
 0x117 PF: > { %s13_s14 = sadd.s32 1, %s1277_s14   ;;  %s1426_s12 = smov %s1273_s13 }
 0x118   : > { %p10_p6 = scmp.ge.s32.totalorder %s13_s14, 4   ;;  %s1427_s13 = smov %s1429_s15 }
 0x11a   :  { %12 = sbr.rel (!%p10_p6) target bundleno = 2 (0x2), region = 84 }

// kernel: up_step.4
= control target key start
LH: loop header
LB: loop body
LE: loop exit
PB: predicated region body
PF: predicated region fallthrough
CT: control target
= control target key end

     0   :  { %s2367_s15 = smov 0   ;;  %s2369_s16 = smov 0   ;;  %s2601_s0 = inlined_call_operand.vmem [shape: f32[2,18,18,2], index: 0, kind: input, shape index: {}]   ;;  %s2602_s1 = inlined_call_operand.vmem [shape: f32[2,16,16,2], index: 1, kind: input, shape index: {}]   ;;  %s2603_s2 = inlined_call_operand.vmem [shape: f32[36,8], index: 2, kind: input, shape index: {}]   ;;  %s2604_s3 = inlined_call_operand.vmem [shape: f32[1,8], index: 3, kind: input, shape index: {}]   ;;  %s2605_s4 = inlined_call_operand.vmem [shape: f32[2,14,14,8], index: 4, kind: output, shape index: {}]  }
   0x1   :  { %s2371_s17 = smov 0  }
   0x2 LB: > { %s26_s18 = sadd.s32 1, %s2332_s16  ;;  %p2019_p0 = scmp.ge.s32.totalorder %s2336_s17, 1  ;;  %s2336_s17 = sphi %s2371_s17, %s14_s17   ;;  %s2332_s16 = sphi %s2369_s16, %s2607_s16   ;;  %s2328_s15 = sphi %s2367_s15, %s2606_s15  }
   0x3   : > { %p28_p1 = scmp.ge.s32.totalorder %s26_s18, 2  ;;  %p186_p2 = scmp.lt.s32.totalorder %s2336_s17, 3 }
   0x5   : > { %s2609_s18 = smov (%p28_p1, %s26_s18), 0  ;;  %p187_p3 = pnand %p2019_p0, %p186_p2 }
   0x6   : > { %p222_p4 = scmp.lt.s32.totalorder (!%p187_p3), %s2328_s15, 1  ;;  %v2388_v0 = vld [vmem:[%s2604_s3] ss:$0 sm:$0xff] (!%p187_p3)  ;;  %s2405_s7 = smov (!%p187_p3), 0  }
   0x7   : > { %190 = sbr.rel (%p187_p3) target bundleno = 312 (0x138), region = 36 }
   0xe   : > { %s2611_s15 = smov (!%p222_p4, %s2328_s15), 1 }
   0xf   : > { %s2276_s21 = smul.u32 432, %s2611_s15  ;;  %s2097_s22 = sshll.u32 %s2611_s15, 8 }
  0x10   : > { %s2393_s25 = scalar_lea.vmem %s2602_s1, %s2097_s22  ;;  %s2277_s26 = smul.u32 224, %s2611_s15 }
  0x11   : > { %s2398_s29 = scalar_lea.vmem %s2601_s0, %s2276_s21 }
  0x12   : > { %s2403_s6 = scalar_lea.vmem %s2605_s4, %s2277_s26 }
  0x13 LB: >> { %vm275_vm0 = vcmask 1041408   ;;  %v1086_v1 = vld [vmem:[%s2603_s2 + $0x12] sm:$0x3]  ;;  %v263_v2 = vld [vmem:[%s2603_s2 + $0x2] sm:$0x3]  ;;  %s1946_s19 = smul.u32 24, %s2340_s7  ;;  %s2340_s7 = sphi %s2405_s7, %s255_s7  }
  0x14   : >> { %2197 = vmatprep.subr.msk.mxu0 %vm275_vm0, %v1086_v1  ;;  %2152 = vmatprep.subr.msk.mxu1 %vm275_vm0, %v263_v2  ;;  %v262_v3 = vld [vmem:[%s2603_s2] sm:$0x3]  ;;  %v1173_v4 = vld [vmem:[%s2603_s2 + $0x14] sm:$0x3]  ;;  %vm270_vm1 = vcmask 15360   ;;  %s2061_s20 = sshll.u32 %s2340_s7, 4 }
  0x15   : >> { %2198 = vmatpush3.msk.msra.mxu0 %vm275_vm0, %v1086_v1  ;;  %2153 = vmatpush3.msk.msra.mxu1 %vm275_vm0, %v263_v2  ;;  %s2431_s21 = scalar_lea.vmem %s2393_s25, %s2061_s20  ;;  %s2436_s22 = scalar_lea.vmem %s2398_s29, %s1946_s19  ;;  %vm266_vm2 = vcmask 1045504   ;;  %vm354_vm3 = vcmask 1046528   ;;  %v1261_v11 = vld [vmem:[%s2603_s2 + $0x16] sm:$0x3]  ;;  %v440_v21 = vld [vmem:[%s2603_s2 + $0x4] sm:$0x3] }
  0x16   : >> { %2157 = vmatprep.subr.msk.mxu1 %vm275_vm0, %v262_v3  ;;  %2202 = vmatprep.subr.msk.mxu0 %vm275_vm0, %v1173_v4  ;;  %v1084_v5 = vld [vmem:[%s2431_s21] sm:$0xff]  ;;  %v1085_v6 = vld [vmem:[%s2431_s21 + $0x8] sm:$0xff]  ;;  %v2025_v9 = vld [vmem:[%s2436_s22 + $0x18] sm:$0xff]  ;;  %vm442_vm4 = vcmask 1044480   ;;  %vm1890_vm5 = vcmask 62464   ;;  %vm1888_vm6 = vcmask 64512  }
  0x17   : >> { %2199 = vmatprep.mubr.msk.f32.mxu0 %vm270_vm1, %v1084_v5  ;;  %v1174_v7 = vrot.slane %v1084_v5, 1  ;;  %v1175_v8 = vrot.slane %v1085_v6, 1  ;;  %v2026_v10 = vld [vmem:[%s2436_s22 + $0x20] sm:$0xff]  ;;  %v267_v12 = vrot.slane %v2025_v9, 2  ;;  %v355_v14 = vrot.slane %v2025_v9, 1  ;;  %v2037_v29 = vld [vmem:[%s2436_s22 + $0x30] sm:$0xff] }
  0x18   : >> { %2200 = vmatmul.mubr.msk.f32.vlgmr.msra.gmra.mrb[0].mxu0 %vm270_vm1, %v1085_v6  ;;  %v268_v13 = vrot.slane %v2026_v10, 2  ;;  %v356_v15 = vrot.slane %v2026_v10, 1  ;;  %v1262_v17 = vrot.slane %v1084_v5, 2  ;;  %v1263_v18 = vrot.slane %v1085_v6, 2  ;;  %v1353_v25 = vld [vmem:[%s2603_s2 + $0x18] sm:$0x3] }
  0x19   : >> { %2203 = vmatpush3.msk.msra.mxu0 %vm275_vm0, %v1173_v4  ;;  %v1176_v16 = vsel %vm354_vm3, %v1174_v7, %v1175_v8  ;;  %v443_v23 = vrot.slane %v2025_v9, 3  ;;  %v444_v24 = vrot.slane %v2026_v10, 3  ;;  %v2027_v27 = vld [vmem:[%s2436_s22 + $0x28] sm:$0x3]  ;;  %v538_v28 = vld [vmem:[%s2603_s2 + $0x6] sm:$0x3] }
  0x1a   : >> { %v269_v19 = vsel %vm266_vm2, %v267_v12, %v268_v13  ;;  %2204 = vmatprep.mubr.msk.f32.mxu0 %vm270_vm1, %v1176_v16  ;;  %v357_v20 = vsel %vm354_vm3, %v355_v14, %v356_v15  ;;  %2207 = vmatprep.subr.msk.mxu0 %vm275_vm0, %v1261_v11  ;;  %v1264_v22 = vsel %vm266_vm2, %v1262_v17, %v1263_v18  ;;  %v2476_v30 = vld [vmem:[%s2436_s22 + $0x38] sm:$0xff]  ;;  %v446_v31 = vrot.slane %v2027_v27, 3  ;;  %v2072_v32 = vld [vmem:[%s2431_s21 + $0x10] sm:$0xff]  ;;  %v628_v41 = vld [vmem:[%s2603_s2 + $0x8] sm:$0x3]  ;;  %s255_s7 = sadd.s32 1, %s2340_s7  }
  0x1b   : >> { %2154 = vmatprep.mubr.msk.f32.mxu1 %vm270_vm1, %v269_v19  ;;  %v445_v26 = vsel %vm442_vm4, %v443_v23, %v444_v24  ;;  %v541_v33 = vrot.slane %v2037_v29, 1  ;;  %v542_v34 = vrot.slane %v2476_v30, 1  ;;  %v1440_v35 = vld [vmem:[%s2603_s2 + $0x1a] sm:$0x3]  ;;  %v1441_v38 = vrot.slane %v2072_v32, 1  ;;  %v2049_v57 = vld [vmem:[%s2436_s22 + $0x48] sm:$0xff] }
  0x1c   : >> { %2155 = vmatmul.mubr.msk.f32.vlgmr.msra.gmra.mrb[0].mxu1 %vm270_vm1, %v268_v13  ;;  %v447_v36 = vsel %vm442_vm4, %v444_v24, %v446_v31  ;;  %v2073_v37 = vld [vmem:[%s2431_s21 + $0x18] sm:$0xff]  ;;  %v629_v43 = vrot.slane %v2037_v29, 2  ;;  %v630_v44 = vrot.slane %v2476_v30, 2  ;;  %v1529_v46 = vrot.slane %v2072_v32, 2  ;;  %v716_v49 = vld [vmem:[%s2603_s2 + $0xa] sm:$0x3] }
  0x1d   : >> { %2158 = vmatpush3.msk.msra.mxu1 %vm275_vm0, %v262_v3  ;;  %2159 = vmatprep.mubr.msk.f32.mxu1 %vm270_vm1, %v357_v20  ;;  %v543_v39 = vsel %vm354_vm3, %v541_v33, %v542_v34  ;;  %v1442_v40 = vrot.slane %v2073_v37, 1  ;;  %v1528_v45 = vld [vmem:[%s2603_s2 + $0x1c] sm:$0x3]  ;;  %v1530_v48 = vrot.slane %v2073_v37, 2  ;;  %v718_v51 = vrot.slane %v2037_v29, 3  ;;  %v2050_v58 = vld [vmem:[%s2436_s22 + $0x50] sm:$0xff] }
  0x1e   : >> { %2162 = vmatprep.subr.msk.mxu1 %vm275_vm0, %v440_v21  ;;  %v631_v47 = vsel %vm266_vm2, %v629_v43, %v630_v44  ;;  %v719_v52 = vrot.slane %v2476_v30, 3  ;;  %v1620_v53 = vld [vmem:[%s2603_s2 + $0x1e] sm:$0x3]  ;;  %v2039_v55 = vld [vmem:[%s2436_s22 + $0x40] sm:$0x3]  ;;  %v816_v61 = vrot.slane %v2049_v57, 1 }
  0x1f   : >> { %v1443_v42 = vsel %vm354_vm3, %v1441_v38, %v1442_v40  ;;  %v1531_v50 = vsel %vm266_vm2, %v1529_v46, %v1530_v48  ;;  %v813_v56 = vld [vmem:[%s2603_s2 + $0xc] sm:$0x3]  ;;  %v721_v59 = vrot.slane %v2039_v55, 3  ;;  %v2084_v60 = vld [vmem:[%s2431_s21 + $0x20] sm:$0xff]  ;;  %v817_v62 = vrot.slane %v2050_v58, 1  ;;  %p252_p5 = scmp.ge.s32.totalorder %s255_s7, 14  }
  0x20   : >> { %2205 = vmatmul.mubr.msk.f32.vlgmr.msra.gmra.mrb[0].mxu0 %vm270_vm1, %v1175_v8  ;;  %v720_v54 = vsel %vm442_vm4, %v718_v51, %v719_v52  ;;  %v1707_v63 = vld [vmem:[%s2603_s2 + $0x20] sm:$0x3]  ;;  %v2085_v2 = vld [vmem:[%s2431_s21 + $0x28] sm:$0xff]  ;;  %v1708_v3 = vrot.slane %v2084_v60, 1  ;;  %v904_v8 = vrot.slane %v2049_v57, 2  ;;  %v905_v9 = vrot.slane %v2050_v58, 2 }
  0x21   : >> { %2208 = vmatpush3.msk.msra.mxu0 %vm275_vm0, %v1261_v11  ;;  %2209 = vmatprep.mubr.msk.f32.mxu0 %vm270_vm1, %v1264_v22  ;;  %v722_v1 = vsel %vm442_vm4, %v719_v52, %v721_v59  ;;  %v818_v4 = vsel %vm354_vm3, %v816_v61, %v817_v62  ;;  %v1709_v5 = vrot.slane %v2085_v2, 1  ;;  %v903_v6 = vld [vmem:[%s2603_s2 + $0xe] sm:$0x3]  ;;  %v1795_v10 = vld [vmem:[%s2603_s2 + $0x22] sm:$0x3]  ;;  %v1796_v11 = vrot.slane %v2084_v60, 2 }
  0x22   : >> { %2212 = vmatprep.subr.msk.mxu0 %vm275_vm0, %v1353_v25  ;;  %v906_v12 = vsel %vm266_vm2, %v904_v8, %v905_v9  ;;  %v1797_v13 = vrot.slane %v2085_v2, 2  ;;  %v991_v14 = vld [vmem:[%s2603_s2 + $0x10] sm:$0x3]  ;;  %v993_v16 = vrot.slane %v2049_v57, 3  ;;  %v994_v17 = vrot.slane %v2050_v58, 3 }
  0x23   : >> { %v1710_v7 = vsel %vm354_vm3, %v1708_v3, %v1709_v5  ;;  %v2051_v19 = vld [vmem:[%s2436_s22 + $0x58] sm:$0x3]  ;;  %s1887_s22 = scalar_lea.vmem %s2403_s6, %s2061_s20 }
  0x24   : >> { %2160 = vmatmul.mubr.msk.f32.vlgmr.msra.gmra.mrb[0].mxu1 %vm270_vm1, %v356_v15  ;;  %v1798_v15 = vsel %vm266_vm2, %v1796_v11, %v1797_v13  ;;  %v996_v20 = vrot.slane %v2051_v19, 3 }
  0x25   : >> { %2163 = vmatpush3.msk.msra.mxu1 %vm275_vm0, %v440_v21  ;;  %2164 = vmatprep.mubr.msk.f32.mxu1 %vm270_vm1, %v445_v26 }
  0x26   : >> { %2167 = vmatprep.subr.msk.mxu1 %vm275_vm0, %v538_v28  ;;  %v997_v21 = vsel %vm442_vm4, %v994_v17, %v996_v20 }
  0x28   : >> { %2210 = vmatmul.mubr.msk.f32.vlgmr.msra.gmra.mrb[0].mxu0 %vm270_vm1, %v1263_v18  ;;  %v995_v18 = vsel %vm442_vm4, %v993_v16, %v994_v17 }
  0x29   : >> { %2213 = vmatpush3.msk.msra.mxu0 %vm275_vm0, %v1353_v25  ;;  %2214 = vmatprep.mubr.msk.f32.mxu0 %vm270_vm1, %v2072_v32 }
  0x2a   : >> { %2217 = vmatprep.subr.msk.mxu0 %vm275_vm0, %v1440_v35 }
  0x2c   : >> { %2165 = vmatmul.mubr.msk.f32.vlgmr.msra.gmra.mrb[0].mxu1 %vm270_vm1, %v447_v36 }
  0x2d   : >> { %2168 = vmatpush3.msk.msra.mxu1 %vm275_vm0, %v538_v28  ;;  %2169 = vmatprep.mubr.msk.f32.mxu1 %vm270_vm1, %v543_v39 }
  0x2e   : >> { %2172 = vmatprep.subr.msk.mxu1 %vm275_vm0, %v628_v41 }
  0x30   : >> { %2215 = vmatmul.mubr.msk.f32.vlgmr.msra.gmra.mrb[0].mxu0 %vm270_vm1, %v2073_v37 }
  0x31   : >> { %2218 = vmatpush3.msk.msra.mxu0 %vm275_vm0, %v1440_v35  ;;  %2219 = vmatprep.mubr.msk.f32.mxu0 %vm270_vm1, %v1443_v42 }
  0x32   : >> { %2222 = vmatprep.subr.msk.mxu0 %vm275_vm0, %v1528_v45 }
  0x34   : >> { %2170 = vmatmul.mubr.msk.f32.vlgmr.msra.gmra.mrb[0].mxu1 %vm270_vm1, %v542_v34 }
  0x35   : >> { %2173 = vmatpush3.msk.msra.mxu1 %vm275_vm0, %v628_v41  ;;  %2174 = vmatprep.mubr.msk.f32.mxu1 %vm270_vm1, %v631_v47 }
  0x36   : >> { %2177 = vmatprep.subr.msk.mxu1 %vm275_vm0, %v716_v49 }
  0x38   : >> { %2220 = vmatmul.mubr.msk.f32.vlgmr.msra.gmra.mrb[0].mxu0 %vm270_vm1, %v1442_v40 }
  0x39   : >> { %2223 = vmatpush3.msk.msra.mxu0 %vm275_vm0, %v1528_v45  ;;  %2224 = vmatprep.mubr.msk.f32.mxu0 %vm270_vm1, %v1531_v50 }
  0x3a   : >> { %2227 = vmatprep.subr.msk.mxu0 %vm275_vm0, %v1620_v53 }
  0x3c   : >> { %2175 = vmatmul.mubr.msk.f32.vlgmr.msra.gmra.mrb[0].mxu1 %vm270_vm1, %v630_v44 }
  0x3d   : >> { %2178 = vmatpush3.msk.msra.mxu1 %vm275_vm0, %v716_v49  ;;  %2179 = vmatprep.mubr.msk.f32.mxu1 %vm270_vm1, %v720_v54 }
  0x3e   : >> { %2182 = vmatprep.subr.msk.mxu1 %vm275_vm0, %v813_v56 }
  0x40   : >> { %2225 = vmatmul.mubr.msk.f32.vlgmr.msra.gmra.mrb[0].mxu0 %vm270_vm1, %v1530_v48 }
  0x41   : >> { %2228 = vmatpush3.msk.msra.mxu0 %vm275_vm0, %v1620_v53  ;;  %2229 = vmatprep.mubr.msk.f32.mxu0 %vm270_vm1, %v2084_v60 }
  0x42   : >> { %2232 = vmatprep.subr.msk.mxu0 %vm275_vm0, %v1707_v63 }
  0x44   : >> { %2180 = vmatmul.mubr.msk.f32.vlgmr.msra.gmra.mrb[0].mxu1 %vm270_vm1, %v722_v1 }
  0x45   : >> { %2183 = vmatpush3.msk.msra.mxu1 %vm275_vm0, %v813_v56  ;;  %2184 = vmatprep.mubr.msk.f32.mxu1 %vm270_vm1, %v818_v4 }
  0x46   : >> { %2187 = vmatprep.subr.msk.mxu1 %vm275_vm0, %v903_v6 }
  0x48   : >> { %2230 = vmatmul.mubr.msk.f32.vlgmr.msra.gmra.mrb[0].mxu0 %vm270_vm1, %v2085_v2 }
  0x49   : >> { %2233 = vmatpush3.msk.msra.mxu0 %vm275_vm0, %v1707_v63  ;;  %2234 = vmatprep.mubr.msk.f32.mxu0 %vm270_vm1, %v1710_v7 }
  0x4a   : >> { %2237 = vmatprep.subr.msk.mxu0 %vm275_vm0, %v1795_v10 }
  0x4c   : >> { %2185 = vmatmul.mubr.msk.f32.vlgmr.msra.gmra.mrb[0].mxu1 %vm270_vm1, %v817_v62 }
  0x4d   : >> { %2188 = vmatpush3.msk.msra.mxu1 %vm275_vm0, %v903_v6  ;;  %2189 = vmatprep.mubr.msk.f32.mxu1 %vm270_vm1, %v906_v12 }
  0x4e   : >> { %2192 = vmatprep.subr.msk.mxu1 %vm275_vm0, %v991_v14 }
  0x50   : >> { %2235 = vmatmul.mubr.msk.f32.vlgmr.msra.gmra.mrb[0].mxu0 %vm270_vm1, %v1709_v5 }
  0x51   : >> { %2238 = vmatpush3.msk.msra.mxu0 %vm275_vm0, %v1795_v10  ;;  %2239 = vmatprep.mubr.msk.f32.mxu0 %vm270_vm1, %v1798_v15 }
  0x54   : >> { %2190 = vmatmul.mubr.msk.f32.vlgmr.msra.gmra.mrb[0].mxu1 %vm270_vm1, %v905_v9 }
  0x55   : >> { %2193 = vmatpush3.msk.msra.mxu1 %vm275_vm0, %v991_v14  ;;  %2194 = vmatprep.mubr.msk.f32.mxu1 %vm270_vm1, %v995_v18 }
  0x58   : >> { %2240 = vmatmul.mubr.msk.f32.vlgmr.msra.gmra.mrb[0].mxu0 %vm270_vm1, %v1797_v13 }
  0x5c   : >> { %2195 = vmatmul.mubr.msk.f32.vlgmr.msra.gmra.mrb[0].mxu1 %vm270_vm1, %v997_v21 }
 0x12b   : >> { %v2241_v22 = vpop.f32.mrb[0].mxu0 }
 0x12c   : >> { %v1872_v23 = vpop.f32.mrb[1].mxu0 }
 0x12f   : >> { %v2196_v24 = vpop.f32.mrb[0].mxu1 }
 0x130   : >> { %v2242_v25 = vadd.f32 %v2241_v22, %v2196_v24  ;;  %v1071_v26 = vpop.f32.mrb[1].mxu1 }
 0x131   : >> { %v2243_v27 = vadd.f32 %v1872_v23, %v1071_v26  ;;  %254 = sbr.rel (!%p252_p5) target bundleno = 19 (0x13), region = 83 }
 0x132   : >> { %v1884_v28 = vadd.f32 %v2242_v25, %v2388_v0 }
 0x133   : >> { %v1883_v29 = vadd.f32 %v2243_v27, %v2388_v0 }
 0x134   : >> { %v1886_v30 = vmax.f32 %v1884_v28, 0.0 }
 0x135   : >> { %v1885_v31 = vmax.f32 %v1883_v29, 0.0 }
 0x136   : >> { %1891 = vst.msk [vmem:[%s1887_s22 + $0x8] sm:$0x3f] %vm1890_vm5, %v1886_v30 }
 0x137   : >> { %1889 = vst.msk [vmem:[%s1887_s22] sm:$0xff] %vm1888_vm6, %v1885_v31 }
 0x138 PF: > { %s14_s17 = sadd.s32 1, %s2336_s17   ;;  %s2606_s15 = smov %s2332_s16 }
 0x139   : > { %p11_p6 = scmp.ge.s32.totalorder %s14_s17, 4   ;;  %s2607_s16 = smov %s2609_s18 }
 0x13b   :  { %13 = sbr.rel (!%p11_p6) target bundleno = 2 (0x2), region = 94 }

</bundles_post_ra>
